<compile_context>
chip_gen: v5e
topology: v5e:2x2
jax: 0.10.0
libtpu: 0.0.40
codegen_flags: <defaults>
</compile_context>

<pallas_src>
import jax
import jax.numpy as jnp
from jax import lax
from jax.experimental import pallas as pl
from jax.experimental.pallas import tpu as pltpu


def lstm_mlp_kernel(xg_ref, whh4_ref, w1_t_ref, b1_ref, w2p_ref, b2p_ref,
                    out_ref):
    """LSTM recurrence (input projection pre-hoisted) + fc1 + fc2.

    xg_ref   : (T, 4, B, H)  precomputed x @ W_ih^T + (b_ih + b_hh),
                             time-major with the gate index on a leading axis
    whh4_ref : (4, H, H)     per-gate recurrent weights, pre-transposed so
                             gate_k = h @ whh4[k]
    w1_t_ref : (I, H)        fc1 weight, pre-transposed (I == H)
    b1_ref   : (1, H)        fc1 bias
    w2p_ref  : (H, O_pad)    fc2 weight, pre-transposed and lane-padded
    b2p_ref  : (1, O_pad)    fc2 bias, lane-padded
    out_ref  : (B, O_pad)    lane-dense output (sliced to O in the wrapper)
    """
    T = xg_ref.shape[0]
    B = xg_ref.shape[2]
    H = whh4_ref.shape[1]

    # Per-gate recurrent weights loaded once (16 vregs at H=32).
    # TODO(synk): at large H read these from VMEM inside the loop (or stage
    # the RHS in the MXU via pltpu.matmul_push_rhs) to avoid vreg spills.
    w_i = whh4_ref[0]
    w_f = whh4_ref[1]
    w_g = whh4_ref[2]
    w_o = whh4_ref[3]

    def sigmoid(x):
        # sigmoid(x) = 0.5*tanh(0.5*x) + 0.5  — one EUP op, no divide.
        return 0.5 * jnp.tanh(0.5 * x) + 0.5

    def step(t, carry):
        h, c = carry
        xg_t = xg_ref[t]  # (4, B, H); leading-axis gate select is free.
        gi = xg_t[0] + jnp.dot(h, w_i, preferred_element_type=jnp.float32)
        gf = xg_t[1] + jnp.dot(h, w_f, preferred_element_type=jnp.float32)
        gg = xg_t[2] + jnp.dot(h, w_g, preferred_element_type=jnp.float32)
        go = xg_t[3] + jnp.dot(h, w_o, preferred_element_type=jnp.float32)
        i = sigmoid(gi)
        f = sigmoid(gf)
        g = jnp.tanh(gg)
        o = sigmoid(go)
        c_new = f * c + i * g
        h_new = o * jnp.tanh(c_new)
        return h_new, c_new

    h0 = jnp.zeros((B, H), jnp.float32)
    c0 = jnp.zeros((B, H), jnp.float32)
    # T is static and small: unroll so the LLO scheduler can overlap VPU/EUP
    # gate math of step t with the MXU latency of step t+1's pushes.
    h_last, _ = lax.fori_loop(0, T, step, (h0, c0), unroll=True)

    # fc1 -> fc2 on the last hidden state (weights already transposed;
    # fc2 output is lane-padded so the final store is an unmasked vst).
    y1 = (jnp.dot(h_last, w1_t_ref[...], preferred_element_type=jnp.float32)
          + b1_ref[...])
    y2 = (jnp.dot(y1, w2p_ref[...], preferred_element_type=jnp.float32)
          + b2p_ref[...])
    out_ref[...] = y2.astype(out_ref.dtype)


def long_short_term_memory_forward(x, params):
    """x: (B, T, I) batch-first, like PyTorch. Returns (B, O)."""
    B, T, I = x.shape
    H = params["w_hh"].shape[1]
    O = params["fc2_w"].shape[0]
    O_pad = max(128, ((O + 127) // 128) * 128)   # lane-dense fc2 output

    # Hoisted input projection for all timesteps: one big (B*T,I)x(I,4H)
    # matmul in XLA, then reshuffled to (T, 4, B, H) so the kernel never
    # slices sub-128-lane gate chunks (no XLU relayouts on the serial chain).
    bias = (params["b_ih"] + params["b_hh"]).reshape(1, 4 * H)
    xg = jnp.dot(x.reshape(B * T, I), params["w_ih"].T,
                 precision=lax.Precision.HIGHEST) + bias          # (B*T, 4H)
    xg = xg.reshape(B, T, 4, H).transpose(1, 2, 0, 3)             # (T,4,B,H)

    # Per-gate recurrent weights, pre-transposed: whh4[k] is (H_in, H_out).
    whh4 = params["w_hh"].reshape(4, H, H).transpose(0, 2, 1)     # (4, H, H)
    w1_t = params["fc1_w"].T                                      # (I, H)
    b1_2d = params["fc1_b"].reshape(1, H)
    w2p = jnp.zeros((H, O_pad), jnp.float32).at[:, :O].set(params["fc2_w"].T)
    b2p = jnp.zeros((1, O_pad), jnp.float32).at[:, :O].set(params["fc2_b"])

    vmem = pl.BlockSpec(memory_space=pltpu.MemorySpace.VMEM)
    out_padded = pl.pallas_call(
        lstm_mlp_kernel,
        out_shape=jax.ShapeDtypeStruct((B, O_pad), x.dtype),
        in_specs=[vmem] * 6,
        out_specs=vmem,
    )(xg, whh4, w1_t, b1_2d, w2p, b2p)
    return out_padded[:, :O]


def reference_forward(x, params):
    """Pure-JAX reference matching PyTorch nn.LSTM semantics (gate order i,f,g,o)."""
    B, T, I = x.shape
    H = params["w_hh"].shape[1]
    h = jnp.zeros((B, H), jnp.float32)
    c = jnp.zeros((B, H), jnp.float32)
    w_ih_t = params["w_ih"].T
    w_hh_t = params["w_hh"].T
    bias = params["b_ih"] + params["b_hh"]
    hi = lax.Precision.HIGHEST
    for t in range(T):
        gates = (jnp.dot(x[:, t, :], w_ih_t, precision=hi)
                 + jnp.dot(h, w_hh_t, precision=hi) + bias)
        i = jax.nn.sigmoid(gates[:, 0 * H:1 * H])
        f = jax.nn.sigmoid(gates[:, 1 * H:2 * H])
        g = jnp.tanh(gates[:, 2 * H:3 * H])
        o = jax.nn.sigmoid(gates[:, 3 * H:4 * H])
        c = f * c + i * g
        h = o * jnp.tanh(c)
    y = jnp.dot(h, params["fc1_w"].T, precision=hi) + params["fc1_b"]
    y = jnp.dot(y, params["fc2_w"].T, precision=hi) + params["fc2_b"]
    return y


def init_params(key, input_size, hidden_size, output_size):
    """Deterministic init mimicking PyTorch's uniform(-1/sqrt(fan), 1/sqrt(fan))."""
    ks = jax.random.split(key, 8)
    H, I, O = hidden_size, input_size, output_size
    s_lstm = 1.0 / jnp.sqrt(H)
    s_fc1 = 1.0 / jnp.sqrt(I)
    s_fc2 = 1.0 / jnp.sqrt(H)
    u = lambda k, shape, s: jax.random.uniform(k, shape, jnp.float32, -s, s)
    return {
        "w_ih": u(ks[0], (4 * H, I), s_lstm),
        "w_hh": u(ks[1], (4 * H, H), s_lstm),
        "b_ih": u(ks[2], (4 * H,), s_lstm),
        "b_hh": u(ks[3], (4 * H,), s_lstm),
        "fc1_w": u(ks[4], (H, I), s_fc1),
        "fc1_b": u(ks[5], (H,), s_fc1),
        "fc2_w": u(ks[6], (O, H), s_fc2),
        "fc2_b": u(ks[7], (O,), s_fc2),
    }


if __name__ == "__main__":
    B, T = 2, 8
    input_size = 32      # must equal hidden_size (see note at top)
    hidden_size = 32
    output_size = 8

    key = jax.random.PRNGKey(0)
    k_x, k_p = jax.random.split(key)
    x = jax.random.normal(k_x, (B, T, input_size), jnp.float32)
    params = init_params(k_p, input_size, hidden_size, output_size)

    fwd = jax.jit(long_short_term_memory_forward)
    out = jax.block_until_ready(fwd(x, params))

    ref = reference_forward(x, params)
    assert out.shape == (B, output_size), out.shape
    max_err = float(jnp.max(jnp.abs(out - ref)))
    assert jnp.allclose(out, ref, atol=1e-4, rtol=1e-4), max_err

    print("KERNEL_OK")
</pallas_src>

<mosaic_0001>
module attributes {stable_mosaic.version = 11 : i64} {
  func.func @lstm_mlp_kernel(%arg0: memref<8x4x2x32xf32, #tpu.memory_space<vmem>>, %arg1: memref<4x32x32xf32, #tpu.memory_space<vmem>>, %arg2: memref<32x32xf32, #tpu.memory_space<vmem>>, %arg3: memref<1x32xf32, #tpu.memory_space<vmem>>, %arg4: memref<32x128xf32, #tpu.memory_space<vmem>>, %arg5: memref<1x128xf32, #tpu.memory_space<vmem>>, %arg6: memref<2x128xf32, #tpu.memory_space<vmem>>) attributes {dimension_semantics = [], scalar_prefetch = 0 : i64, scratch_operands = 0 : i64, tpu.core_type = #tpu.core_type<tc>} {
    %c0 = arith.constant 0 : index
    %c0_0 = arith.constant 0 : index
    %c0_1 = arith.constant 0 : index
    %0 = vector.load %arg1[%c0, %c0_0, %c0_1] : memref<4x32x32xf32, #tpu.memory_space<vmem>>, vector<1x32x32xf32>
    %1 = vector.shape_cast %0 : vector<1x32x32xf32> to vector<32x32xf32>
    %c1 = arith.constant 1 : index
    %c0_2 = arith.constant 0 : index
    %c0_3 = arith.constant 0 : index
    %2 = vector.load %arg1[%c1, %c0_2, %c0_3] : memref<4x32x32xf32, #tpu.memory_space<vmem>>, vector<1x32x32xf32>
    %3 = vector.shape_cast %2 : vector<1x32x32xf32> to vector<32x32xf32>
    %c2 = arith.constant 2 : index
    %c0_4 = arith.constant 0 : index
    %c0_5 = arith.constant 0 : index
    %4 = vector.load %arg1[%c2, %c0_4, %c0_5] : memref<4x32x32xf32, #tpu.memory_space<vmem>>, vector<1x32x32xf32>
    %5 = vector.shape_cast %4 : vector<1x32x32xf32> to vector<32x32xf32>
    %c3 = arith.constant 3 : index
    %c0_6 = arith.constant 0 : index
    %c0_7 = arith.constant 0 : index
    %6 = vector.load %arg1[%c3, %c0_6, %c0_7] : memref<4x32x32xf32, #tpu.memory_space<vmem>>, vector<1x32x32xf32>
    %7 = vector.shape_cast %6 : vector<1x32x32xf32> to vector<32x32xf32>
    %cst = arith.constant 0.000000e+00 : f32
    %8 = vector.broadcast %cst : f32 to vector<2x32xf32>
    %cst_8 = arith.constant 0.000000e+00 : f32
    %9 = vector.broadcast %cst_8 : f32 to vector<2x32xf32>
    %c0_i32 = arith.constant 0 : i32
    %10 = arith.index_cast %c0_i32 : i32 to index
    %c0_9 = arith.constant 0 : index
    %c0_10 = arith.constant 0 : index
    %c0_11 = arith.constant 0 : index
    %11 = vector.load %arg0[%10, %c0_9, %c0_10, %c0_11] : memref<8x4x2x32xf32, #tpu.memory_space<vmem>>, vector<1x4x2x32xf32>
    %12 = vector.shape_cast %11 : vector<1x4x2x32xf32> to vector<4x2x32xf32>
    %13 = vector.extract_strided_slice %12 {offsets = [0, 0, 0], sizes = [1, 2, 32], strides = [1, 1, 1]} : vector<4x2x32xf32> to vector<1x2x32xf32>
    %14 = vector.shape_cast %13 : vector<1x2x32xf32> to vector<2x32xf32>
    %cst_12 = arith.constant dense<0.000000e+00> : vector<2x32xf32>
    %15 = tpu.matmul %8, %1, %cst_12 {dimension_numbers = #tpu.dot_dimension_numbers<[1], [0], [0], [1], [0, 0, 1, 1], [], []>} : vector<2x32xf32>, vector<32x32xf32>, vector<2x32xf32> -> vector<2x32xf32>
    %16 = arith.addf %14, %15 : vector<2x32xf32>
    %17 = vector.extract_strided_slice %12 {offsets = [1, 0, 0], sizes = [1, 2, 32], strides = [1, 1, 1]} : vector<4x2x32xf32> to vector<1x2x32xf32>
    %18 = vector.shape_cast %17 : vector<1x2x32xf32> to vector<2x32xf32>
    %cst_13 = arith.constant dense<0.000000e+00> : vector<2x32xf32>
    %19 = tpu.matmul %8, %3, %cst_13 {dimension_numbers = #tpu.dot_dimension_numbers<[1], [0], [0], [1], [0, 0, 1, 1], [], []>} : vector<2x32xf32>, vector<32x32xf32>, vector<2x32xf32> -> vector<2x32xf32>
    %20 = arith.addf %18, %19 : vector<2x32xf32>
    %21 = vector.extract_strided_slice %12 {offsets = [2, 0, 0], sizes = [1, 2, 32], strides = [1, 1, 1]} : vector<4x2x32xf32> to vector<1x2x32xf32>
    %22 = vector.shape_cast %21 : vector<1x2x32xf32> to vector<2x32xf32>
    %cst_14 = arith.constant dense<0.000000e+00> : vector<2x32xf32>
    %23 = tpu.matmul %8, %5, %cst_14 {dimension_numbers = #tpu.dot_dimension_numbers<[1], [0], [0], [1], [0, 0, 1, 1], [], []>} : vector<2x32xf32>, vector<32x32xf32>, vector<2x32xf32> -> vector<2x32xf32>
    %24 = arith.addf %22, %23 : vector<2x32xf32>
    %25 = vector.extract_strided_slice %12 {offsets = [3, 0, 0], sizes = [1, 2, 32], strides = [1, 1, 1]} : vector<4x2x32xf32> to vector<1x2x32xf32>
    %26 = vector.shape_cast %25 : vector<1x2x32xf32> to vector<2x32xf32>
    %cst_15 = arith.constant dense<0.000000e+00> : vector<2x32xf32>
    %27 = tpu.matmul %8, %7, %cst_15 {dimension_numbers = #tpu.dot_dimension_numbers<[1], [0], [0], [1], [0, 0, 1, 1], [], []>} : vector<2x32xf32>, vector<32x32xf32>, vector<2x32xf32> -> vector<2x32xf32>
    %28 = arith.addf %26, %27 : vector<2x32xf32>
    %cst_16 = arith.constant 5.000000e-01 : f32
    %29 = vector.broadcast %cst_16 : f32 to vector<2x32xf32>
    %30 = arith.mulf %29, %16 : vector<2x32xf32>
    %31 = math.tanh %30 : vector<2x32xf32>
    %cst_17 = arith.constant 5.000000e-01 : f32
    %32 = vector.broadcast %cst_17 : f32 to vector<2x32xf32>
    %33 = arith.mulf %32, %31 : vector<2x32xf32>
    %cst_18 = arith.constant 5.000000e-01 : f32
    %34 = vector.broadcast %cst_18 : f32 to vector<2x32xf32>
    %35 = arith.addf %33, %34 : vector<2x32xf32>
    %cst_19 = arith.constant 5.000000e-01 : f32
    %36 = vector.broadcast %cst_19 : f32 to vector<2x32xf32>
    %37 = arith.mulf %36, %20 : vector<2x32xf32>
    %38 = math.tanh %37 : vector<2x32xf32>
    %cst_20 = arith.constant 5.000000e-01 : f32
    %39 = vector.broadcast %cst_20 : f32 to vector<2x32xf32>
    %40 = arith.mulf %39, %38 : vector<2x32xf32>
    %cst_21 = arith.constant 5.000000e-01 : f32
    %41 = vector.broadcast %cst_21 : f32 to vector<2x32xf32>
    %42 = arith.addf %40, %41 : vector<2x32xf32>
    %43 = math.tanh %24 : vector<2x32xf32>
    %cst_22 = arith.constant 5.000000e-01 : f32
    %44 = vector.broadcast %cst_22 : f32 to vector<2x32xf32>
    %45 = arith.mulf %44, %28 : vector<2x32xf32>
    %46 = math.tanh %45 : vector<2x32xf32>
    %cst_23 = arith.constant 5.000000e-01 : f32
    %47 = vector.broadcast %cst_23 : f32 to vector<2x32xf32>
    %48 = arith.mulf %47, %46 : vector<2x32xf32>
    %cst_24 = arith.constant 5.000000e-01 : f32
    %49 = vector.broadcast %cst_24 : f32 to vector<2x32xf32>
    %50 = arith.addf %48, %49 : vector<2x32xf32>
    %51 = arith.mulf %42, %9 : vector<2x32xf32>
    %52 = arith.mulf %35, %43 : vector<2x32xf32>
    %53 = arith.addf %51, %52 : vector<2x32xf32>
    %54 = math.tanh %53 : vector<2x32xf32>
    %55 = arith.mulf %50, %54 : vector<2x32xf32>
    %c1_i32 = arith.constant 1 : i32
    %56 = arith.index_cast %c1_i32 : i32 to index
    %c0_25 = arith.constant 0 : index
    %c0_26 = arith.constant 0 : index
    %c0_27 = arith.constant 0 : index
    %57 = vector.load %arg0[%56, %c0_25, %c0_26, %c0_27] : memref<8x4x2x32xf32, #tpu.memory_space<vmem>>, vector<1x4x2x32xf32>
    %58 = vector.shape_cast %57 : vector<1x4x2x32xf32> to vector<4x2x32xf32>
    %59 = vector.extract_strided_slice %58 {offsets = [0, 0, 0], sizes = [1, 2, 32], strides = [1, 1, 1]} : vector<4x2x32xf32> to vector<1x2x32xf32>
    %60 = vector.shape_cast %59 : vector<1x2x32xf32> to vector<2x32xf32>
    %cst_28 = arith.constant dense<0.000000e+00> : vector<2x32xf32>
    %61 = tpu.matmul %55, %1, %cst_28 {dimension_numbers = #tpu.dot_dimension_numbers<[1], [0], [0], [1], [0, 0, 1, 1], [], []>} : vector<2x32xf32>, vector<32x32xf32>, vector<2x32xf32> -> vector<2x32xf32>
    %62 = arith.addf %60, %61 : vector<2x32xf32>
    %63 = vector.extract_strided_slice %58 {offsets = [1, 0, 0], sizes = [1, 2, 32], strides = [1, 1, 1]} : vector<4x2x32xf32> to vector<1x2x32xf32>
    %64 = vector.shape_cast %63 : vector<1x2x32xf32> to vector<2x32xf32>
    %cst_29 = arith.constant dense<0.000000e+00> : vector<2x32xf32>
    %65 = tpu.matmul %55, %3, %cst_29 {dimension_numbers = #tpu.dot_dimension_numbers<[1], [0], [0], [1], [0, 0, 1, 1], [], []>} : vector<2x32xf32>, vector<32x32xf32>, vector<2x32xf32> -> vector<2x32xf32>
    %66 = arith.addf %64, %65 : vector<2x32xf32>
    %67 = vector.extract_strided_slice %58 {offsets = [2, 0, 0], sizes = [1, 2, 32], strides = [1, 1, 1]} : vector<4x2x32xf32> to vector<1x2x32xf32>
    %68 = vector.shape_cast %67 : vector<1x2x32xf32> to vector<2x32xf32>
    %cst_30 = arith.constant dense<0.000000e+00> : vector<2x32xf32>
    %69 = tpu.matmul %55, %5, %cst_30 {dimension_numbers = #tpu.dot_dimension_numbers<[1], [0], [0], [1], [0, 0, 1, 1], [], []>} : vector<2x32xf32>, vector<32x32xf32>, vector<2x32xf32> -> vector<2x32xf32>
    %70 = arith.addf %68, %69 : vector<2x32xf32>
    %71 = vector.extract_strided_slice %58 {offsets = [3, 0, 0], sizes = [1, 2, 32], strides = [1, 1, 1]} : vector<4x2x32xf32> to vector<1x2x32xf32>
    %72 = vector.shape_cast %71 : vector<1x2x32xf32> to vector<2x32xf32>
    %cst_31 = arith.constant dense<0.000000e+00> : vector<2x32xf32>
    %73 = tpu.matmul %55, %7, %cst_31 {dimension_numbers = #tpu.dot_dimension_numbers<[1], [0], [0], [1], [0, 0, 1, 1], [], []>} : vector<2x32xf32>, vector<32x32xf32>, vector<2x32xf32> -> vector<2x32xf32>
    %74 = arith.addf %72, %73 : vector<2x32xf32>
    %cst_32 = arith.constant 5.000000e-01 : f32
    %75 = vector.broadcast %cst_32 : f32 to vector<2x32xf32>
    %76 = arith.mulf %75, %62 : vector<2x32xf32>
    %77 = math.tanh %76 : vector<2x32xf32>
    %cst_33 = arith.constant 5.000000e-01 : f32
    %78 = vector.broadcast %cst_33 : f32 to vector<2x32xf32>
    %79 = arith.mulf %78, %77 : vector<2x32xf32>
    %cst_34 = arith.constant 5.000000e-01 : f32
    %80 = vector.broadcast %cst_34 : f32 to vector<2x32xf32>
    %81 = arith.addf %79, %80 : vector<2x32xf32>
    %cst_35 = arith.constant 5.000000e-01 : f32
    %82 = vector.broadcast %cst_35 : f32 to vector<2x32xf32>
    %83 = arith.mulf %82, %66 : vector<2x32xf32>
    %84 = math.tanh %83 : vector<2x32xf32>
    %cst_36 = arith.constant 5.000000e-01 : f32
    %85 = vector.broadcast %cst_36 : f32 to vector<2x32xf32>
    %86 = arith.mulf %85, %84 : vector<2x32xf32>
    %cst_37 = arith.constant 5.000000e-01 : f32
    %87 = vector.broadcast %cst_37 : f32 to vector<2x32xf32>
    %88 = arith.addf %86, %87 : vector<2x32xf32>
    %89 = math.tanh %70 : vector<2x32xf32>
    %cst_38 = arith.constant 5.000000e-01 : f32
    %90 = vector.broadcast %cst_38 : f32 to vector<2x32xf32>
    %91 = arith.mulf %90, %74 : vector<2x32xf32>
    %92 = math.tanh %91 : vector<2x32xf32>
    %cst_39 = arith.constant 5.000000e-01 : f32
    %93 = vector.broadcast %cst_39 : f32 to vector<2x32xf32>
    %94 = arith.mulf %93, %92 : vector<2x32xf32>
    %cst_40 = arith.constant 5.000000e-01 : f32
    %95 = vector.broadcast %cst_40 : f32 to vector<2x32xf32>
    %96 = arith.addf %94, %95 : vector<2x32xf32>
    %97 = arith.mulf %88, %53 : vector<2x32xf32>
    %98 = arith.mulf %81, %89 : vector<2x32xf32>
    %99 = arith.addf %97, %98 : vector<2x32xf32>
    %100 = math.tanh %99 : vector<2x32xf32>
    %101 = arith.mulf %96, %100 : vector<2x32xf32>
    %c2_i32 = arith.constant 2 : i32
    %102 = arith.index_cast %c2_i32 : i32 to index
    %c0_41 = arith.constant 0 : index
    %c0_42 = arith.constant 0 : index
    %c0_43 = arith.constant 0 : index
    %103 = vector.load %arg0[%102, %c0_41, %c0_42, %c0_43] : memref<8x4x2x32xf32, #tpu.memory_space<vmem>>, vector<1x4x2x32xf32>
    %104 = vector.shape_cast %103 : vector<1x4x2x32xf32> to vector<4x2x32xf32>
    %105 = vector.extract_strided_slice %104 {offsets = [0, 0, 0], sizes = [1, 2, 32], strides = [1, 1, 1]} : vector<4x2x32xf32> to vector<1x2x32xf32>
    %106 = vector.shape_cast %105 : vector<1x2x32xf32> to vector<2x32xf32>
    %cst_44 = arith.constant dense<0.000000e+00> : vector<2x32xf32>
    %107 = tpu.matmul %101, %1, %cst_44 {dimension_numbers = #tpu.dot_dimension_numbers<[1], [0], [0], [1], [0, 0, 1, 1], [], []>} : vector<2x32xf32>, vector<32x32xf32>, vector<2x32xf32> -> vector<2x32xf32>
    %108 = arith.addf %106, %107 : vector<2x32xf32>
    %109 = vector.extract_strided_slice %104 {offsets = [1, 0, 0], sizes = [1, 2, 32], strides = [1, 1, 1]} : vector<4x2x32xf32> to vector<1x2x32xf32>
    %110 = vector.shape_cast %109 : vector<1x2x32xf32> to vector<2x32xf32>
    %cst_45 = arith.constant dense<0.000000e+00> : vector<2x32xf32>
    %111 = tpu.matmul %101, %3, %cst_45 {dimension_numbers = #tpu.dot_dimension_numbers<[1], [0], [0], [1], [0, 0, 1, 1], [], []>} : vector<2x32xf32>, vector<32x32xf32>, vector<2x32xf32> -> vector<2x32xf32>
    %112 = arith.addf %110, %111 : vector<2x32xf32>
    %113 = vector.extract_strided_slice %104 {offsets = [2, 0, 0], sizes = [1, 2, 32], strides = [1, 1, 1]} : vector<4x2x32xf32> to vector<1x2x32xf32>
    %114 = vector.shape_cast %113 : vector<1x2x32xf32> to vector<2x32xf32>
    %cst_46 = arith.constant dense<0.000000e+00> : vector<2x32xf32>
    %115 = tpu.matmul %101, %5, %cst_46 {dimension_numbers = #tpu.dot_dimension_numbers<[1], [0], [0], [1], [0, 0, 1, 1], [], []>} : vector<2x32xf32>, vector<32x32xf32>, vector<2x32xf32> -> vector<2x32xf32>
    %116 = arith.addf %114, %115 : vector<2x32xf32>
    %117 = vector.extract_strided_slice %104 {offsets = [3, 0, 0], sizes = [1, 2, 32], strides = [1, 1, 1]} : vector<4x2x32xf32> to vector<1x2x32xf32>
    %118 = vector.shape_cast %117 : vector<1x2x32xf32> to vector<2x32xf32>
    %cst_47 = arith.constant dense<0.000000e+00> : vector<2x32xf32>
    %119 = tpu.matmul %101, %7, %cst_47 {dimension_numbers = #tpu.dot_dimension_numbers<[1], [0], [0], [1], [0, 0, 1, 1], [], []>} : vector<2x32xf32>, vector<32x32xf32>, vector<2x32xf32> -> vector<2x32xf32>
    %120 = arith.addf %118, %119 : vector<2x32xf32>
    %cst_48 = arith.constant 5.000000e-01 : f32
    %121 = vector.broadcast %cst_48 : f32 to vector<2x32xf32>
    %122 = arith.mulf %121, %108 : vector<2x32xf32>
    %123 = math.tanh %122 : vector<2x32xf32>
    %cst_49 = arith.constant 5.000000e-01 : f32
    %124 = vector.broadcast %cst_49 : f32 to vector<2x32xf32>
    %125 = arith.mulf %124, %123 : vector<2x32xf32>
    %cst_50 = arith.constant 5.000000e-01 : f32
    %126 = vector.broadcast %cst_50 : f32 to vector<2x32xf32>
    %127 = arith.addf %125, %126 : vector<2x32xf32>
    %cst_51 = arith.constant 5.000000e-01 : f32
    %128 = vector.broadcast %cst_51 : f32 to vector<2x32xf32>
    %129 = arith.mulf %128, %112 : vector<2x32xf32>
    %130 = math.tanh %129 : vector<2x32xf32>
    %cst_52 = arith.constant 5.000000e-01 : f32
    %131 = vector.broadcast %cst_52 : f32 to vector<2x32xf32>
    %132 = arith.mulf %131, %130 : vector<2x32xf32>
    %cst_53 = arith.constant 5.000000e-01 : f32
    %133 = vector.broadcast %cst_53 : f32 to vector<2x32xf32>
    %134 = arith.addf %132, %133 : vector<2x32xf32>
    %135 = math.tanh %116 : vector<2x32xf32>
    %cst_54 = arith.constant 5.000000e-01 : f32
    %136 = vector.broadcast %cst_54 : f32 to vector<2x32xf32>
    %137 = arith.mulf %136, %120 : vector<2x32xf32>
    %138 = math.tanh %137 : vector<2x32xf32>
    %cst_55 = arith.constant 5.000000e-01 : f32
    %139 = vector.broadcast %cst_55 : f32 to vector<2x32xf32>
    %140 = arith.mulf %139, %138 : vector<2x32xf32>
    %cst_56 = arith.constant 5.000000e-01 : f32
    %141 = vector.broadcast %cst_56 : f32 to vector<2x32xf32>
    %142 = arith.addf %140, %141 : vector<2x32xf32>
    %143 = arith.mulf %134, %99 : vector<2x32xf32>
    %144 = arith.mulf %127, %135 : vector<2x32xf32>
    %145 = arith.addf %143, %144 : vector<2x32xf32>
    %146 = math.tanh %145 : vector<2x32xf32>
    %147 = arith.mulf %142, %146 : vector<2x32xf32>
    %c3_i32 = arith.constant 3 : i32
    %148 = arith.index_cast %c3_i32 : i32 to index
    %c0_57 = arith.constant 0 : index
    %c0_58 = arith.constant 0 : index
    %c0_59 = arith.constant 0 : index
    %149 = vector.load %arg0[%148, %c0_57, %c0_58, %c0_59] : memref<8x4x2x32xf32, #tpu.memory_space<vmem>>, vector<1x4x2x32xf32>
    %150 = vector.shape_cast %149 : vector<1x4x2x32xf32> to vector<4x2x32xf32>
    %151 = vector.extract_strided_slice %150 {offsets = [0, 0, 0], sizes = [1, 2, 32], strides = [1, 1, 1]} : vector<4x2x32xf32> to vector<1x2x32xf32>
    %152 = vector.shape_cast %151 : vector<1x2x32xf32> to vector<2x32xf32>
    %cst_60 = arith.constant dense<0.000000e+00> : vector<2x32xf32>
    %153 = tpu.matmul %147, %1, %cst_60 {dimension_numbers = #tpu.dot_dimension_numbers<[1], [0], [0], [1], [0, 0, 1, 1], [], []>} : vector<2x32xf32>, vector<32x32xf32>, vector<2x32xf32> -> vector<2x32xf32>
    %154 = arith.addf %152, %153 : vector<2x32xf32>
    %155 = vector.extract_strided_slice %150 {offsets = [1, 0, 0], sizes = [1, 2, 32], strides = [1, 1, 1]} : vector<4x2x32xf32> to vector<1x2x32xf32>
    %156 = vector.shape_cast %155 : vector<1x2x32xf32> to vector<2x32xf32>
    %cst_61 = arith.constant dense<0.000000e+00> : vector<2x32xf32>
    %157 = tpu.matmul %147, %3, %cst_61 {dimension_numbers = #tpu.dot_dimension_numbers<[1], [0], [0], [1], [0, 0, 1, 1], [], []>} : vector<2x32xf32>, vector<32x32xf32>, vector<2x32xf32> -> vector<2x32xf32>
    %158 = arith.addf %156, %157 : vector<2x32xf32>
    %159 = vector.extract_strided_slice %150 {offsets = [2, 0, 0], sizes = [1, 2, 32], strides = [1, 1, 1]} : vector<4x2x32xf32> to vector<1x2x32xf32>
    %160 = vector.shape_cast %159 : vector<1x2x32xf32> to vector<2x32xf32>
    %cst_62 = arith.constant dense<0.000000e+00> : vector<2x32xf32>
    %161 = tpu.matmul %147, %5, %cst_62 {dimension_numbers = #tpu.dot_dimension_numbers<[1], [0], [0], [1], [0, 0, 1, 1], [], []>} : vector<2x32xf32>, vector<32x32xf32>, vector<2x32xf32> -> vector<2x32xf32>
    %162 = arith.addf %160, %161 : vector<2x32xf32>
    %163 = vector.extract_strided_slice %150 {offsets = [3, 0, 0], sizes = [1, 2, 32], strides = [1, 1, 1]} : vector<4x2x32xf32> to vector<1x2x32xf32>
    %164 = vector.shape_cast %163 : vector<1x2x32xf32> to vector<2x32xf32>
    %cst_63 = arith.constant dense<0.000000e+00> : vector<2x32xf32>
    %165 = tpu.matmul %147, %7, %cst_63 {dimension_numbers = #tpu.dot_dimension_numbers<[1], [0], [0], [1], [0, 0, 1, 1], [], []>} : vector<2x32xf32>, vector<32x32xf32>, vector<2x32xf32> -> vector<2x32xf32>
    %166 = arith.addf %164, %165 : vector<2x32xf32>
    %cst_64 = arith.constant 5.000000e-01 : f32
    %167 = vector.broadcast %cst_64 : f32 to vector<2x32xf32>
    %168 = arith.mulf %167, %154 : vector<2x32xf32>
    %169 = math.tanh %168 : vector<2x32xf32>
    %cst_65 = arith.constant 5.000000e-01 : f32
    %170 = vector.broadcast %cst_65 : f32 to vector<2x32xf32>
    %171 = arith.mulf %170, %169 : vector<2x32xf32>
    %cst_66 = arith.constant 5.000000e-01 : f32
    %172 = vector.broadcast %cst_66 : f32 to vector<2x32xf32>
    %173 = arith.addf %171, %172 : vector<2x32xf32>
    %cst_67 = arith.constant 5.000000e-01 : f32
    %174 = vector.broadcast %cst_67 : f32 to vector<2x32xf32>
    %175 = arith.mulf %174, %158 : vector<2x32xf32>
    %176 = math.tanh %175 : vector<2x32xf32>
    %cst_68 = arith.constant 5.000000e-01 : f32
    %177 = vector.broadcast %cst_68 : f32 to vector<2x32xf32>
    %178 = arith.mulf %177, %176 : vector<2x32xf32>
    %cst_69 = arith.constant 5.000000e-01 : f32
    %179 = vector.broadcast %cst_69 : f32 to vector<2x32xf32>
    %180 = arith.addf %178, %179 : vector<2x32xf32>
    %181 = math.tanh %162 : vector<2x32xf32>
    %cst_70 = arith.constant 5.000000e-01 : f32
    %182 = vector.broadcast %cst_70 : f32 to vector<2x32xf32>
    %183 = arith.mulf %182, %166 : vector<2x32xf32>
    %184 = math.tanh %183 : vector<2x32xf32>
    %cst_71 = arith.constant 5.000000e-01 : f32
    %185 = vector.broadcast %cst_71 : f32 to vector<2x32xf32>
    %186 = arith.mulf %185, %184 : vector<2x32xf32>
    %cst_72 = arith.constant 5.000000e-01 : f32
    %187 = vector.broadcast %cst_72 : f32 to vector<2x32xf32>
    %188 = arith.addf %186, %187 : vector<2x32xf32>
    %189 = arith.mulf %180, %145 : vector<2x32xf32>
    %190 = arith.mulf %173, %181 : vector<2x32xf32>
    %191 = arith.addf %189, %190 : vector<2x32xf32>
    %192 = math.tanh %191 : vector<2x32xf32>
    %193 = arith.mulf %188, %192 : vector<2x32xf32>
    %c4_i32 = arith.constant 4 : i32
    %194 = arith.index_cast %c4_i32 : i32 to index
    %c0_73 = arith.constant 0 : index
    %c0_74 = arith.constant 0 : index
    %c0_75 = arith.constant 0 : index
    %195 = vector.load %arg0[%194, %c0_73, %c0_74, %c0_75] : memref<8x4x2x32xf32, #tpu.memory_space<vmem>>, vector<1x4x2x32xf32>
    %196 = vector.shape_cast %195 : vector<1x4x2x32xf32> to vector<4x2x32xf32>
    %197 = vector.extract_strided_slice %196 {offsets = [0, 0, 0], sizes = [1, 2, 32], strides = [1, 1, 1]} : vector<4x2x32xf32> to vector<1x2x32xf32>
    %198 = vector.shape_cast %197 : vector<1x2x32xf32> to vector<2x32xf32>
    %cst_76 = arith.constant dense<0.000000e+00> : vector<2x32xf32>
    %199 = tpu.matmul %193, %1, %cst_76 {dimension_numbers = #tpu.dot_dimension_numbers<[1], [0], [0], [1], [0, 0, 1, 1], [], []>} : vector<2x32xf32>, vector<32x32xf32>, vector<2x32xf32> -> vector<2x32xf32>
    %200 = arith.addf %198, %199 : vector<2x32xf32>
    %201 = vector.extract_strided_slice %196 {offsets = [1, 0, 0], sizes = [1, 2, 32], strides = [1, 1, 1]} : vector<4x2x32xf32> to vector<1x2x32xf32>
    %202 = vector.shape_cast %201 : vector<1x2x32xf32> to vector<2x32xf32>
    %cst_77 = arith.constant dense<0.000000e+00> : vector<2x32xf32>
    %203 = tpu.matmul %193, %3, %cst_77 {dimension_numbers = #tpu.dot_dimension_numbers<[1], [0], [0], [1], [0, 0, 1, 1], [], []>} : vector<2x32xf32>, vector<32x32xf32>, vector<2x32xf32> -> vector<2x32xf32>
    %204 = arith.addf %202, %203 : vector<2x32xf32>
    %205 = vector.extract_strided_slice %196 {offsets = [2, 0, 0], sizes = [1, 2, 32], strides = [1, 1, 1]} : vector<4x2x32xf32> to vector<1x2x32xf32>
    %206 = vector.shape_cast %205 : vector<1x2x32xf32> to vector<2x32xf32>
    %cst_78 = arith.constant dense<0.000000e+00> : vector<2x32xf32>
    %207 = tpu.matmul %193, %5, %cst_78 {dimension_numbers = #tpu.dot_dimension_numbers<[1], [0], [0], [1], [0, 0, 1, 1], [], []>} : vector<2x32xf32>, vector<32x32xf32>, vector<2x32xf32> -> vector<2x32xf32>
    %208 = arith.addf %206, %207 : vector<2x32xf32>
    %209 = vector.extract_strided_slice %196 {offsets = [3, 0, 0], sizes = [1, 2, 32], strides = [1, 1, 1]} : vector<4x2x32xf32> to vector<1x2x32xf32>
    %210 = vector.shape_cast %209 : vector<1x2x32xf32> to vector<2x32xf32>
    %cst_79 = arith.constant dense<0.000000e+00> : vector<2x32xf32>
    %211 = tpu.matmul %193, %7, %cst_79 {dimension_numbers = #tpu.dot_dimension_numbers<[1], [0], [0], [1], [0, 0, 1, 1], [], []>} : vector<2x32xf32>, vector<32x32xf32>, vector<2x32xf32> -> vector<2x32xf32>
    %212 = arith.addf %210, %211 : vector<2x32xf32>
    %cst_80 = arith.constant 5.000000e-01 : f32
    %213 = vector.broadcast %cst_80 : f32 to vector<2x32xf32>
    %214 = arith.mulf %213, %200 : vector<2x32xf32>
    %215 = math.tanh %214 : vector<2x32xf32>
    %cst_81 = arith.constant 5.000000e-01 : f32
    %216 = vector.broadcast %cst_81 : f32 to vector<2x32xf32>
    %217 = arith.mulf %216, %215 : vector<2x32xf32>
    %cst_82 = arith.constant 5.000000e-01 : f32
    %218 = vector.broadcast %cst_82 : f32 to vector<2x32xf32>
    %219 = arith.addf %217, %218 : vector<2x32xf32>
    %cst_83 = arith.constant 5.000000e-01 : f32
    %220 = vector.broadcast %cst_83 : f32 to vector<2x32xf32>
    %221 = arith.mulf %220, %204 : vector<2x32xf32>
    %222 = math.tanh %221 : vector<2x32xf32>
    %cst_84 = arith.constant 5.000000e-01 : f32
    %223 = vector.broadcast %cst_84 : f32 to vector<2x32xf32>
    %224 = arith.mulf %223, %222 : vector<2x32xf32>
    %cst_85 = arith.constant 5.000000e-01 : f32
    %225 = vector.broadcast %cst_85 : f32 to vector<2x32xf32>
    %226 = arith.addf %224, %225 : vector<2x32xf32>
    %227 = math.tanh %208 : vector<2x32xf32>
    %cst_86 = arith.constant 5.000000e-01 : f32
    %228 = vector.broadcast %cst_86 : f32 to vector<2x32xf32>
    %229 = arith.mulf %228, %212 : vector<2x32xf32>
    %230 = math.tanh %229 : vector<2x32xf32>
    %cst_87 = arith.constant 5.000000e-01 : f32
    %231 = vector.broadcast %cst_87 : f32 to vector<2x32xf32>
    %232 = arith.mulf %231, %230 : vector<2x32xf32>
    %cst_88 = arith.constant 5.000000e-01 : f32
    %233 = vector.broadcast %cst_88 : f32 to vector<2x32xf32>
    %234 = arith.addf %232, %233 : vector<2x32xf32>
    %235 = arith.mulf %226, %191 : vector<2x32xf32>
    %236 = arith.mulf %219, %227 : vector<2x32xf32>
    %237 = arith.addf %235, %236 : vector<2x32xf32>
    %238 = math.tanh %237 : vector<2x32xf32>
    %239 = arith.mulf %234, %238 : vector<2x32xf32>
    %c5_i32 = arith.constant 5 : i32
    %240 = arith.index_cast %c5_i32 : i32 to index
    %c0_89 = arith.constant 0 : index
    %c0_90 = arith.constant 0 : index
    %c0_91 = arith.constant 0 : index
    %241 = vector.load %arg0[%240, %c0_89, %c0_90, %c0_91] : memref<8x4x2x32xf32, #tpu.memory_space<vmem>>, vector<1x4x2x32xf32>
    %242 = vector.shape_cast %241 : vector<1x4x2x32xf32> to vector<4x2x32xf32>
    %243 = vector.extract_strided_slice %242 {offsets = [0, 0, 0], sizes = [1, 2, 32], strides = [1, 1, 1]} : vector<4x2x32xf32> to vector<1x2x32xf32>
    %244 = vector.shape_cast %243 : vector<1x2x32xf32> to vector<2x32xf32>
    %cst_92 = arith.constant dense<0.000000e+00> : vector<2x32xf32>
    %245 = tpu.matmul %239, %1, %cst_92 {dimension_numbers = #tpu.dot_dimension_numbers<[1], [0], [0], [1], [0, 0, 1, 1], [], []>} : vector<2x32xf32>, vector<32x32xf32>, vector<2x32xf32> -> vector<2x32xf32>
    %246 = arith.addf %244, %245 : vector<2x32xf32>
    %247 = vector.extract_strided_slice %242 {offsets = [1, 0, 0], sizes = [1, 2, 32], strides = [1, 1, 1]} : vector<4x2x32xf32> to vector<1x2x32xf32>
    %248 = vector.shape_cast %247 : vector<1x2x32xf32> to vector<2x32xf32>
    %cst_93 = arith.constant dense<0.000000e+00> : vector<2x32xf32>
    %249 = tpu.matmul %239, %3, %cst_93 {dimension_numbers = #tpu.dot_dimension_numbers<[1], [0], [0], [1], [0, 0, 1, 1], [], []>} : vector<2x32xf32>, vector<32x32xf32>, vector<2x32xf32> -> vector<2x32xf32>
    %250 = arith.addf %248, %249 : vector<2x32xf32>
    %251 = vector.extract_strided_slice %242 {offsets = [2, 0, 0], sizes = [1, 2, 32], strides = [1, 1, 1]} : vector<4x2x32xf32> to vector<1x2x32xf32>
    %252 = vector.shape_cast %251 : vector<1x2x32xf32> to vector<2x32xf32>
    %cst_94 = arith.constant dense<0.000000e+00> : vector<2x32xf32>
    %253 = tpu.matmul %239, %5, %cst_94 {dimension_numbers = #tpu.dot_dimension_numbers<[1], [0], [0], [1], [0, 0, 1, 1], [], []>} : vector<2x32xf32>, vector<32x32xf32>, vector<2x32xf32> -> vector<2x32xf32>
    %254 = arith.addf %252, %253 : vector<2x32xf32>
    %255 = vector.extract_strided_slice %242 {offsets = [3, 0, 0], sizes = [1, 2, 32], strides = [1, 1, 1]} : vector<4x2x32xf32> to vector<1x2x32xf32>
    %256 = vector.shape_cast %255 : vector<1x2x32xf32> to vector<2x32xf32>
    %cst_95 = arith.constant dense<0.000000e+00> : vector<2x32xf32>
    %257 = tpu.matmul %239, %7, %cst_95 {dimension_numbers = #tpu.dot_dimension_numbers<[1], [0], [0], [1], [0, 0, 1, 1], [], []>} : vector<2x32xf32>, vector<32x32xf32>, vector<2x32xf32> -> vector<2x32xf32>
    %258 = arith.addf %256, %257 : vector<2x32xf32>
    %cst_96 = arith.constant 5.000000e-01 : f32
    %259 = vector.broadcast %cst_96 : f32 to vector<2x32xf32>
    %260 = arith.mulf %259, %246 : vector<2x32xf32>
    %261 = math.tanh %260 : vector<2x32xf32>
    %cst_97 = arith.constant 5.000000e-01 : f32
    %262 = vector.broadcast %cst_97 : f32 to vector<2x32xf32>
    %263 = arith.mulf %262, %261 : vector<2x32xf32>
    %cst_98 = arith.constant 5.000000e-01 : f32
    %264 = vector.broadcast %cst_98 : f32 to vector<2x32xf32>
    %265 = arith.addf %263, %264 : vector<2x32xf32>
    %cst_99 = arith.constant 5.000000e-01 : f32
    %266 = vector.broadcast %cst_99 : f32 to vector<2x32xf32>
    %267 = arith.mulf %266, %250 : vector<2x32xf32>
    %268 = math.tanh %267 : vector<2x32xf32>
    %cst_100 = arith.constant 5.000000e-01 : f32
    %269 = vector.broadcast %cst_100 : f32 to vector<2x32xf32>
    %270 = arith.mulf %269, %268 : vector<2x32xf32>
    %cst_101 = arith.constant 5.000000e-01 : f32
    %271 = vector.broadcast %cst_101 : f32 to vector<2x32xf32>
    %272 = arith.addf %270, %271 : vector<2x32xf32>
    %273 = math.tanh %254 : vector<2x32xf32>
    %cst_102 = arith.constant 5.000000e-01 : f32
    %274 = vector.broadcast %cst_102 : f32 to vector<2x32xf32>
    %275 = arith.mulf %274, %258 : vector<2x32xf32>
    %276 = math.tanh %275 : vector<2x32xf32>
    %cst_103 = arith.constant 5.000000e-01 : f32
    %277 = vector.broadcast %cst_103 : f32 to vector<2x32xf32>
    %278 = arith.mulf %277, %276 : vector<2x32xf32>
    %cst_104 = arith.constant 5.000000e-01 : f32
    %279 = vector.broadcast %cst_104 : f32 to vector<2x32xf32>
    %280 = arith.addf %278, %279 : vector<2x32xf32>
    %281 = arith.mulf %272, %237 : vector<2x32xf32>
    %282 = arith.mulf %265, %273 : vector<2x32xf32>
    %283 = arith.addf %281, %282 : vector<2x32xf32>
    %284 = math.tanh %283 : vector<2x32xf32>
    %285 = arith.mulf %280, %284 : vector<2x32xf32>
    %c6_i32 = arith.constant 6 : i32
    %286 = arith.index_cast %c6_i32 : i32 to index
    %c0_105 = arith.constant 0 : index
    %c0_106 = arith.constant 0 : index
    %c0_107 = arith.constant 0 : index
    %287 = vector.load %arg0[%286, %c0_105, %c0_106, %c0_107] : memref<8x4x2x32xf32, #tpu.memory_space<vmem>>, vector<1x4x2x32xf32>
    %288 = vector.shape_cast %287 : vector<1x4x2x32xf32> to vector<4x2x32xf32>
    %289 = vector.extract_strided_slice %288 {offsets = [0, 0, 0], sizes = [1, 2, 32], strides = [1, 1, 1]} : vector<4x2x32xf32> to vector<1x2x32xf32>
    %290 = vector.shape_cast %289 : vector<1x2x32xf32> to vector<2x32xf32>
    %cst_108 = arith.constant dense<0.000000e+00> : vector<2x32xf32>
    %291 = tpu.matmul %285, %1, %cst_108 {dimension_numbers = #tpu.dot_dimension_numbers<[1], [0], [0], [1], [0, 0, 1, 1], [], []>} : vector<2x32xf32>, vector<32x32xf32>, vector<2x32xf32> -> vector<2x32xf32>
    %292 = arith.addf %290, %291 : vector<2x32xf32>
    %293 = vector.extract_strided_slice %288 {offsets = [1, 0, 0], sizes = [1, 2, 32], strides = [1, 1, 1]} : vector<4x2x32xf32> to vector<1x2x32xf32>
    %294 = vector.shape_cast %293 : vector<1x2x32xf32> to vector<2x32xf32>
    %cst_109 = arith.constant dense<0.000000e+00> : vector<2x32xf32>
    %295 = tpu.matmul %285, %3, %cst_109 {dimension_numbers = #tpu.dot_dimension_numbers<[1], [0], [0], [1], [0, 0, 1, 1], [], []>} : vector<2x32xf32>, vector<32x32xf32>, vector<2x32xf32> -> vector<2x32xf32>
    %296 = arith.addf %294, %295 : vector<2x32xf32>
    %297 = vector.extract_strided_slice %288 {offsets = [2, 0, 0], sizes = [1, 2, 32], strides = [1, 1, 1]} : vector<4x2x32xf32> to vector<1x2x32xf32>
    %298 = vector.shape_cast %297 : vector<1x2x32xf32> to vector<2x32xf32>
    %cst_110 = arith.constant dense<0.000000e+00> : vector<2x32xf32>
    %299 = tpu.matmul %285, %5, %cst_110 {dimension_numbers = #tpu.dot_dimension_numbers<[1], [0], [0], [1], [0, 0, 1, 1], [], []>} : vector<2x32xf32>, vector<32x32xf32>, vector<2x32xf32> -> vector<2x32xf32>
    %300 = arith.addf %298, %299 : vector<2x32xf32>
    %301 = vector.extract_strided_slice %288 {offsets = [3, 0, 0], sizes = [1, 2, 32], strides = [1, 1, 1]} : vector<4x2x32xf32> to vector<1x2x32xf32>
    %302 = vector.shape_cast %301 : vector<1x2x32xf32> to vector<2x32xf32>
    %cst_111 = arith.constant dense<0.000000e+00> : vector<2x32xf32>
    %303 = tpu.matmul %285, %7, %cst_111 {dimension_numbers = #tpu.dot_dimension_numbers<[1], [0], [0], [1], [0, 0, 1, 1], [], []>} : vector<2x32xf32>, vector<32x32xf32>, vector<2x32xf32> -> vector<2x32xf32>
    %304 = arith.addf %302, %303 : vector<2x32xf32>
    %cst_112 = arith.constant 5.000000e-01 : f32
    %305 = vector.broadcast %cst_112 : f32 to vector<2x32xf32>
    %306 = arith.mulf %305, %292 : vector<2x32xf32>
    %307 = math.tanh %306 : vector<2x32xf32>
    %cst_113 = arith.constant 5.000000e-01 : f32
    %308 = vector.broadcast %cst_113 : f32 to vector<2x32xf32>
    %309 = arith.mulf %308, %307 : vector<2x32xf32>
    %cst_114 = arith.constant 5.000000e-01 : f32
    %310 = vector.broadcast %cst_114 : f32 to vector<2x32xf32>
    %311 = arith.addf %309, %310 : vector<2x32xf32>
    %cst_115 = arith.constant 5.000000e-01 : f32
    %312 = vector.broadcast %cst_115 : f32 to vector<2x32xf32>
    %313 = arith.mulf %312, %296 : vector<2x32xf32>
    %314 = math.tanh %313 : vector<2x32xf32>
    %cst_116 = arith.constant 5.000000e-01 : f32
    %315 = vector.broadcast %cst_116 : f32 to vector<2x32xf32>
    %316 = arith.mulf %315, %314 : vector<2x32xf32>
    %cst_117 = arith.constant 5.000000e-01 : f32
    %317 = vector.broadcast %cst_117 : f32 to vector<2x32xf32>
    %318 = arith.addf %316, %317 : vector<2x32xf32>
    %319 = math.tanh %300 : vector<2x32xf32>
    %cst_118 = arith.constant 5.000000e-01 : f32
    %320 = vector.broadcast %cst_118 : f32 to vector<2x32xf32>
    %321 = arith.mulf %320, %304 : vector<2x32xf32>
    %322 = math.tanh %321 : vector<2x32xf32>
    %cst_119 = arith.constant 5.000000e-01 : f32
    %323 = vector.broadcast %cst_119 : f32 to vector<2x32xf32>
    %324 = arith.mulf %323, %322 : vector<2x32xf32>
    %cst_120 = arith.constant 5.000000e-01 : f32
    %325 = vector.broadcast %cst_120 : f32 to vector<2x32xf32>
    %326 = arith.addf %324, %325 : vector<2x32xf32>
    %327 = arith.mulf %318, %283 : vector<2x32xf32>
    %328 = arith.mulf %311, %319 : vector<2x32xf32>
    %329 = arith.addf %327, %328 : vector<2x32xf32>
    %330 = math.tanh %329 : vector<2x32xf32>
    %331 = arith.mulf %326, %330 : vector<2x32xf32>
    %c7_i32 = arith.constant 7 : i32
    %332 = arith.index_cast %c7_i32 : i32 to index
    %c0_121 = arith.constant 0 : index
    %c0_122 = arith.constant 0 : index
    %c0_123 = arith.constant 0 : index
    %333 = vector.load %arg0[%332, %c0_121, %c0_122, %c0_123] : memref<8x4x2x32xf32, #tpu.memory_space<vmem>>, vector<1x4x2x32xf32>
    %334 = vector.shape_cast %333 : vector<1x4x2x32xf32> to vector<4x2x32xf32>
    %335 = vector.extract_strided_slice %334 {offsets = [0, 0, 0], sizes = [1, 2, 32], strides = [1, 1, 1]} : vector<4x2x32xf32> to vector<1x2x32xf32>
    %336 = vector.shape_cast %335 : vector<1x2x32xf32> to vector<2x32xf32>
    %cst_124 = arith.constant dense<0.000000e+00> : vector<2x32xf32>
    %337 = tpu.matmul %331, %1, %cst_124 {dimension_numbers = #tpu.dot_dimension_numbers<[1], [0], [0], [1], [0, 0, 1, 1], [], []>} : vector<2x32xf32>, vector<32x32xf32>, vector<2x32xf32> -> vector<2x32xf32>
    %338 = arith.addf %336, %337 : vector<2x32xf32>
    %339 = vector.extract_strided_slice %334 {offsets = [1, 0, 0], sizes = [1, 2, 32], strides = [1, 1, 1]} : vector<4x2x32xf32> to vector<1x2x32xf32>
    %340 = vector.shape_cast %339 : vector<1x2x32xf32> to vector<2x32xf32>
    %cst_125 = arith.constant dense<0.000000e+00> : vector<2x32xf32>
    %341 = tpu.matmul %331, %3, %cst_125 {dimension_numbers = #tpu.dot_dimension_numbers<[1], [0], [0], [1], [0, 0, 1, 1], [], []>} : vector<2x32xf32>, vector<32x32xf32>, vector<2x32xf32> -> vector<2x32xf32>
    %342 = arith.addf %340, %341 : vector<2x32xf32>
    %343 = vector.extract_strided_slice %334 {offsets = [2, 0, 0], sizes = [1, 2, 32], strides = [1, 1, 1]} : vector<4x2x32xf32> to vector<1x2x32xf32>
    %344 = vector.shape_cast %343 : vector<1x2x32xf32> to vector<2x32xf32>
    %cst_126 = arith.constant dense<0.000000e+00> : vector<2x32xf32>
    %345 = tpu.matmul %331, %5, %cst_126 {dimension_numbers = #tpu.dot_dimension_numbers<[1], [0], [0], [1], [0, 0, 1, 1], [], []>} : vector<2x32xf32>, vector<32x32xf32>, vector<2x32xf32> -> vector<2x32xf32>
    %346 = arith.addf %344, %345 : vector<2x32xf32>
    %347 = vector.extract_strided_slice %334 {offsets = [3, 0, 0], sizes = [1, 2, 32], strides = [1, 1, 1]} : vector<4x2x32xf32> to vector<1x2x32xf32>
    %348 = vector.shape_cast %347 : vector<1x2x32xf32> to vector<2x32xf32>
    %cst_127 = arith.constant dense<0.000000e+00> : vector<2x32xf32>
    %349 = tpu.matmul %331, %7, %cst_127 {dimension_numbers = #tpu.dot_dimension_numbers<[1], [0], [0], [1], [0, 0, 1, 1], [], []>} : vector<2x32xf32>, vector<32x32xf32>, vector<2x32xf32> -> vector<2x32xf32>
    %350 = arith.addf %348, %349 : vector<2x32xf32>
    %cst_128 = arith.constant 5.000000e-01 : f32
    %351 = vector.broadcast %cst_128 : f32 to vector<2x32xf32>
    %352 = arith.mulf %351, %338 : vector<2x32xf32>
    %353 = math.tanh %352 : vector<2x32xf32>
    %cst_129 = arith.constant 5.000000e-01 : f32
    %354 = vector.broadcast %cst_129 : f32 to vector<2x32xf32>
    %355 = arith.mulf %354, %353 : vector<2x32xf32>
    %cst_130 = arith.constant 5.000000e-01 : f32
    %356 = vector.broadcast %cst_130 : f32 to vector<2x32xf32>
    %357 = arith.addf %355, %356 : vector<2x32xf32>
    %cst_131 = arith.constant 5.000000e-01 : f32
    %358 = vector.broadcast %cst_131 : f32 to vector<2x32xf32>
    %359 = arith.mulf %358, %342 : vector<2x32xf32>
    %360 = math.tanh %359 : vector<2x32xf32>
    %cst_132 = arith.constant 5.000000e-01 : f32
    %361 = vector.broadcast %cst_132 : f32 to vector<2x32xf32>
    %362 = arith.mulf %361, %360 : vector<2x32xf32>
    %cst_133 = arith.constant 5.000000e-01 : f32
    %363 = vector.broadcast %cst_133 : f32 to vector<2x32xf32>
    %364 = arith.addf %362, %363 : vector<2x32xf32>
    %365 = math.tanh %346 : vector<2x32xf32>
    %cst_134 = arith.constant 5.000000e-01 : f32
    %366 = vector.broadcast %cst_134 : f32 to vector<2x32xf32>
    %367 = arith.mulf %366, %350 : vector<2x32xf32>
    %368 = math.tanh %367 : vector<2x32xf32>
    %cst_135 = arith.constant 5.000000e-01 : f32
    %369 = vector.broadcast %cst_135 : f32 to vector<2x32xf32>
    %370 = arith.mulf %369, %368 : vector<2x32xf32>
    %cst_136 = arith.constant 5.000000e-01 : f32
    %371 = vector.broadcast %cst_136 : f32 to vector<2x32xf32>
    %372 = arith.addf %370, %371 : vector<2x32xf32>
    %373 = arith.mulf %364, %329 : vector<2x32xf32>
    %374 = arith.mulf %357, %365 : vector<2x32xf32>
    %375 = arith.addf %373, %374 : vector<2x32xf32>
    %376 = math.tanh %375 : vector<2x32xf32>
    %377 = arith.mulf %372, %376 : vector<2x32xf32>
    %c8_i32 = arith.constant 8 : i32
    %c0_137 = arith.constant 0 : index
    %c0_138 = arith.constant 0 : index
    %378 = vector.load %arg2[%c0_137, %c0_138] : memref<32x32xf32, #tpu.memory_space<vmem>>, vector<32x32xf32>
    %cst_139 = arith.constant dense<0.000000e+00> : vector<2x32xf32>
    %379 = tpu.matmul %377, %378, %cst_139 {dimension_numbers = #tpu.dot_dimension_numbers<[1], [0], [0], [1], [0, 0, 1, 1], [], []>} : vector<2x32xf32>, vector<32x32xf32>, vector<2x32xf32> -> vector<2x32xf32>
    %c0_140 = arith.constant 0 : index
    %c0_141 = arith.constant 0 : index
    %380 = vector.load %arg3[%c0_140, %c0_141] : memref<1x32xf32, #tpu.memory_space<vmem>>, vector<1x32xf32>
    %381 = vector.broadcast %380 : vector<1x32xf32> to vector<2x32xf32>
    %382 = arith.addf %379, %381 : vector<2x32xf32>
    %c0_142 = arith.constant 0 : index
    %c0_143 = arith.constant 0 : index
    %383 = vector.load %arg4[%c0_142, %c0_143] : memref<32x128xf32, #tpu.memory_space<vmem>>, vector<32x128xf32>
    %cst_144 = arith.constant dense<0.000000e+00> : vector<2x128xf32>
    %384 = tpu.matmul %382, %383, %cst_144 {dimension_numbers = #tpu.dot_dimension_numbers<[1], [0], [0], [1], [0, 0, 1, 1], [], []>} : vector<2x32xf32>, vector<32x128xf32>, vector<2x128xf32> -> vector<2x128xf32>
    %c0_145 = arith.constant 0 : index
    %c0_146 = arith.constant 0 : index
    %385 = vector.load %arg5[%c0_145, %c0_146] : memref<1x128xf32, #tpu.memory_space<vmem>>, vector<1x128xf32>
    %386 = vector.broadcast %385 : vector<1x128xf32> to vector<2x128xf32>
    %387 = arith.addf %384, %386 : vector<2x128xf32>
    %c0_147 = arith.constant 0 : index
    %c0_148 = arith.constant 0 : index
    %388 = vector.load %arg6[%c0_147, %c0_148] : memref<2x128xf32, #tpu.memory_space<vmem>>, vector<2x128xf32>
    tpu.vector_store %arg6[%c0_147, %c0_148], %387 {strides = array<i32>} : memref<2x128xf32, #tpu.memory_space<vmem>>, vector<2x128xf32>,
    return
  }
}

</mosaic_0001>

<bundles_post_ra>
// kernel: long_short_term_memory_forward.1
= control target key start
LH: loop header
LB: loop body
LE: loop exit
PB: predicated region body
PF: predicated region fallthrough
CT: control target
= control target key end

     0   :  { %s1586_s0 = inlined_call_operand.vmem [shape: f32[8,4,2,32], index: 0, kind: input, shape index: {}]   ;;  %s1587_s1 = inlined_call_operand.vmem [shape: f32[4,32,32], index: 1, kind: input, shape index: {}]   ;;  %s1588_s2 = inlined_call_operand.vmem [shape: f32[32,32], index: 2, kind: input, shape index: {}]   ;;  %s1589_s3 = inlined_call_operand.vmem [shape: f32[1,32], index: 3, kind: input, shape index: {}]   ;;  %s1590_s4 = inlined_call_operand.vmem [shape: f32[32,128], index: 4, kind: input, shape index: {}]   ;;  %s1591_s5 = inlined_call_operand.vmem [shape: f32[1,128], index: 5, kind: input, shape index: {}]   ;;  %s1592_s6 = inlined_call_operand.hbm [shape: f32[2,128], index: 6, kind: output, shape index: {}]  }
   0x1   :  { %v1222_v0 = vld [vmem:[%s1587_s1 + $0x18] sm:$0xff]  ;;  %v1239_v3 = vld [vmem:[%s1587_s1 + $0x10] sm:$0xff]  ;;  %v1255_v6 = vld [vmem:[%s1587_s1 + $0x8] sm:$0xff] }
   0x2   :  { %v1227_v1 = vld [vmem:[%s1587_s1 + $0x38] sm:$0xff]  ;;  %63 = vmatpush.msra.mxu0 %v1222_v0  ;;  %v1244_v4 = vld [vmem:[%s1587_s1 + $0x30] sm:$0xff]  ;;  %v1260_v7 = vld [vmem:[%s1587_s1 + $0x28] sm:$0xff] }
   0x3   :  { %v1232_v2 = vld [vmem:[%s1587_s1 + $0x58] sm:$0xff]  ;;  %84 = vmatpush.msra.mxu1 %v1227_v1  ;;  %v1249_v5 = vld [vmem:[%s1587_s1 + $0x50] sm:$0xff]  ;;  %v1267_v8 = vld [vmem:[%s1587_s1 + $0x48] sm:$0xff] }
   0x4   :  { %105 = vmatpush.msra.mxu2 %v1232_v2  ;;  %64 = vmatpush.msra.mxu0 %v1239_v3  ;;  %v1272_v9 = vld [vmem:[%s1587_s1 + $0x78] sm:$0xff]  ;;  %v1279_v10 = vld [vmem:[%s1587_s1] sm:$0xff]  ;;  %v1289_v12 = vld [vmem:[%s1587_s1 + $0x70] sm:$0xff] }
   0x5   :  { %85 = vmatpush.msra.mxu1 %v1244_v4  ;;  %126 = vmatpush.msra.mxu3 %v1272_v9  ;;  %v1284_v11 = vld [vmem:[%s1587_s1 + $0x20] sm:$0xff] }
   0x6   :  { %106 = vmatpush.msra.mxu2 %v1249_v5  ;;  %65 = vmatpush.msra.mxu0 %v1255_v6  ;;  %v1296_v13 = vld [vmem:[%s1587_s1 + $0x40] sm:$0xff] }
   0x7   :  { %86 = vmatpush.msra.mxu1 %v1260_v7  ;;  %127 = vmatpush.msra.mxu3 %v1289_v12 }
   0x8   :  { %107 = vmatpush.msra.mxu2 %v1267_v8 }
   0x9   :  { %11 = vsyncpa [#allocation3], 0  ;;  %66 = vmatpush.msra.mxu0 %v1279_v10  ;;  %87 = vmatpush.msra.mxu1 %v1284_v11  ;;  %v1305_v14 = vld [vmem:[%s1587_s1 + $0x68] sm:$0xff]  ;;  %v1182_v15 = vmov 0.0   ;;  %v1311_v16 = vld [vmem:[%s1587_s1 + $0x60] sm:$0xff]  ;;  %vm47_vm0 = vcmask 261120  }
   0xa   :  { %108 = vmatpush.msra.mxu2 %v1296_v13  ;;  %67 = vmatmul.f32.vlgmr.msra.gmra.mxu0 %v1182_v15  ;;  %v43_v17 = vld [vmem:[%s1586_s0] sm:$0x3]  ;;  %v44_v18 = vld [vmem:[%s1586_s0 + $0x2] sm:$0x3]  ;;  %v45_v25 = vld [vmem:[%s1586_s0 + $0x4] sm:$0x3] }
   0xb   :  { %88 = vmatmul.f32.vlgmr.msra.gmra.mxu1 %v1182_v15  ;;  %109 = vmatmul.f32.vlgmr.msra.gmra.mxu2 %v1182_v15  ;;  %v46_v28 = vld [vmem:[%s1586_s0 + $0x6] sm:$0x3]  ;;  %v1014_v47 = vld [vmem:[%s1586_s0 + $0x8] sm:$0x3]  ;;  %v1015_v48 = vld [vmem:[%s1586_s0 + $0xa] sm:$0x3] }
   0xc   :  { %128 = vmatpush.msra.mxu3 %v1305_v14  ;;  %173 = vmatpush.msrb.mxu0 %v1222_v0  ;;  %v1016_v55 = vld [vmem:[%s1586_s0 + $0xc] sm:$0x3]  ;;  %v1017_v56 = vld [vmem:[%s1586_s0 + $0xe] sm:$0x3]  ;;  %s1183_s11 = smov [#allocation2]   ;;  %s993_s15 = sshll.u32 %s1592_s6, 4  ;;  %s994_s15 = int_to_ptr.hbm [resolvable:$true] %s993_s15 }
   0xd   :  { %194 = vmatpush.msrb.mxu1 %v1227_v1  ;;  %215 = vmatpush.msrb.mxu2 %v1232_v2  ;;  %s991_s12 = sshll.u32 %s1183_s11, 4  ;;  %s992_s12 = int_to_ptr.vmem [resolvable:$true] %s991_s12 }
   0xe   :  { %129 = vmatpush.msra.mxu3 %v1311_v16  ;;  %174 = vmatpush.msrb.mxu0 %v1239_v3 }
   0xf   :  { %130 = vmatmul.f32.vlgmr.msra.gmra.mxu3 %v1182_v15  ;;  %195 = vmatpush.msrb.mxu1 %v1244_v4 }
  0x10   :  { %236 = vmatpush.msrb.mxu3 %v1272_v9  ;;  %216 = vmatpush.msrb.mxu2 %v1249_v5 }
  0x11   :  { %175 = vmatpush.msrb.mxu0 %v1255_v6  ;;  %196 = vmatpush.msrb.mxu1 %v1260_v7 }
  0x12   :  { %237 = vmatpush.msrb.mxu3 %v1289_v12  ;;  %217 = vmatpush.msrb.mxu2 %v1267_v8 }
  0x13   :  { %176 = vmatpush.msrb.mxu0 %v1279_v10  ;;  %197 = vmatpush.msrb.mxu1 %v1284_v11 }
  0x14   :  { %238 = vmatpush.msrb.mxu3 %v1305_v14  ;;  %218 = vmatpush.msrb.mxu2 %v1296_v13 }
  0x15   :  { %283 = vmatpush.msra.mxu0 %v1222_v0  ;;  %304 = vmatpush.msra.mxu1 %v1227_v1 }
  0x16   :  { %239 = vmatpush.msrb.mxu3 %v1311_v16  ;;  %325 = vmatpush.msra.mxu2 %v1232_v2 }
  0x17   :  { %284 = vmatpush.msra.mxu0 %v1239_v3  ;;  %305 = vmatpush.msra.mxu1 %v1244_v4 }
  0x18   :  { %346 = vmatpush.msra.mxu3 %v1272_v9  ;;  %326 = vmatpush.msra.mxu2 %v1249_v5 }
  0x19   :  { %285 = vmatpush.msra.mxu0 %v1255_v6  ;;  %306 = vmatpush.msra.mxu1 %v1260_v7 }
  0x1a   :  { %347 = vmatpush.msra.mxu3 %v1289_v12  ;;  %327 = vmatpush.msra.mxu2 %v1267_v8 }
  0x1b   :  { %286 = vmatpush.msra.mxu0 %v1279_v10  ;;  %307 = vmatpush.msra.mxu1 %v1284_v11 }
  0x1c   :  { %348 = vmatpush.msra.mxu3 %v1305_v14  ;;  %328 = vmatpush.msra.mxu2 %v1296_v13 }
  0x1e   :  { %349 = vmatpush.msra.mxu3 %v1311_v16 }
  0x87   :  { %v68_v19 = vpop.f32.mrf.mxu0 }
  0x88   :  { %v71_v20 = vadd.f32 %v68_v19, %v43_v17  ;;  %v89_v21 = vpop.f32.mrf.mxu1 }
  0x89   :  { %v92_v22 = vadd.f32 %v89_v21, %v44_v18 }
  0x8a   :  { %v135_v23 = vmul.f32 0.5, %v71_v20 }
  0x8b   :  { %v139_v24 = vmul.f32 0.5, %v92_v22 }
  0x8c   :  { %1076 = vtanh.f32 %v135_v23 }
  0x8d   :  { %1078 = vtanh.f32 %v139_v24 }
  0x8e   :  { %v110_v26 = vpop.f32.mrf.mxu2 }
  0x8f   :  { %v113_v27 = vadd.f32 %v110_v26, %v45_v25 }
  0x91   :  { %1080 = vtanh.f32 %v113_v27 }
  0x92   :  { %v1077_v29 = vpop.eup %1076  ;;  %v131_v30 = vpop.f32.mrf.mxu3 }
  0x93   :  { %v1079_v31 = vpop.eup %1078  ;;  %v137_v32 = vmul.f32 0.5, %v1077_v29  ;;  %v134_v33 = vadd.f32 %v131_v30, %v46_v28  ;;  %v1022_v29 = vld [vmem:[%s1586_s0 + $0x10] sm:$0x3]  ;;  %v1023_v30 = vld [vmem:[%s1586_s0 + $0x12] sm:$0x3] }
  0x94   :  { %v141_v34 = vmul.f32 0.5, %v1079_v31 }
  0x95   :  { %v138_v35 = vadd.f32 0.5, %v137_v32  ;;  %v144_v36 = vmul.f32 0.5, %v134_v33 }
  0x96   :  { %v142_v37 = vadd.f32 0.5, %v141_v34 }
  0x97   :  { %v1081_v38 = vpop.eup %1080  ;;  %1082 = vtanh.f32 %v144_v36 }
  0x98   :  { %v148_v39 = vmul.f32 0.0, %v142_v37  ;;  %v149_v40 = vmul.f32 %v1081_v38, %v138_v35  ;;  %v1024_v37 = vld [vmem:[%s1586_s0 + $0x14] sm:$0x3]  ;;  %v1025_v38 = vld [vmem:[%s1586_s0 + $0x16] sm:$0x3] }
  0x9a   :  { %v150_v41 = vadd.f32 %v149_v40, %v148_v39 }
  0x9c   :  { %1084 = vtanh.f32 %v150_v41 }
  0x9d   :  { %v1083_v42 = vpop.eup %1082 }
  0x9e   :  { %v146_v43 = vmul.f32 0.5, %v1083_v42 }
  0xa0   :  { %v147_v44 = vadd.f32 0.5, %v146_v43 }
  0xa2   :  { %v1085_v45 = vpop.eup %1084 }
  0xa3   :  { %v152_v46 = vmul.f32 %v1085_v45, %v147_v44 }
  0xa5   :  { %1018 = vmatmul.msk.f32.vlgmr.msrb.gmra.mxu0 %vm47_vm0, %v152_v46  ;;  %1019 = vmatmul.msk.f32.vlgmr.msrb.gmra.mxu1 %vm47_vm0, %v152_v46 }
  0xa6   :  { %1020 = vmatmul.msk.f32.vlgmr.msrb.gmra.mxu2 %vm47_vm0, %v152_v46  ;;  %1021 = vmatmul.msk.f32.vlgmr.msrb.gmra.mxu3 %vm47_vm0, %v152_v46 }
  0xa7   :  { %393 = vmatpush.msrb.mxu0 %v1222_v0  ;;  %414 = vmatpush.msrb.mxu1 %v1227_v1 }
  0xa8   :  { %435 = vmatpush.msrb.mxu2 %v1232_v2  ;;  %456 = vmatpush.msrb.mxu3 %v1272_v9 }
  0xa9   :  { %394 = vmatpush.msrb.mxu0 %v1239_v3  ;;  %415 = vmatpush.msrb.mxu1 %v1244_v4 }
  0xaa   :  { %436 = vmatpush.msrb.mxu2 %v1249_v5  ;;  %457 = vmatpush.msrb.mxu3 %v1289_v12 }
  0xab   :  { %395 = vmatpush.msrb.mxu0 %v1255_v6  ;;  %416 = vmatpush.msrb.mxu1 %v1260_v7 }
  0xac   :  { %437 = vmatpush.msrb.mxu2 %v1267_v8  ;;  %458 = vmatpush.msrb.mxu3 %v1305_v14 }
  0xad   :  { %396 = vmatpush.msrb.mxu0 %v1279_v10  ;;  %417 = vmatpush.msrb.mxu1 %v1284_v11 }
  0xae   :  { %438 = vmatpush.msrb.mxu2 %v1296_v13  ;;  %459 = vmatpush.msrb.mxu3 %v1311_v16 }
 0x122   :  { %v178_v49 = vpop.f32.mrf.mxu0  ;;  %v199_v50 = vpop.f32.mrf.mxu1 }
 0x123   :  { %v181_v51 = vadd.f32 %v1014_v47, %v178_v49  ;;  %v202_v52 = vadd.f32 %v1015_v48, %v199_v50 }
 0x125   :  { %v245_v53 = vmul.f32 0.5, %v181_v51  ;;  %v249_v54 = vmul.f32 0.5, %v202_v52 }
 0x127   :  { %1086 = vtanh.f32 %v245_v53 }
 0x128   :  { %1088 = vtanh.f32 %v249_v54 }
 0x129   :  { %v220_v57 = vpop.f32.mrf.mxu2  ;;  %v241_v58 = vpop.f32.mrf.mxu3 }
 0x12a   :  { %v223_v59 = vadd.f32 %v1016_v55, %v220_v57  ;;  %v244_v60 = vadd.f32 %v1017_v56, %v241_v58 }
 0x12c   :  { %1090 = vtanh.f32 %v223_v59  ;;  %v254_v61 = vmul.f32 0.5, %v244_v60  ;;  %v1030_v59 = vld [vmem:[%s1586_s0 + $0x18] sm:$0x3]  ;;  %v1031_v60 = vld [vmem:[%s1586_s0 + $0x1a] sm:$0x3] }
 0x12d   :  { %v1087_v62 = vpop.eup %1086 }
 0x12e   :  { %v1089_v63 = vpop.eup %1088  ;;  %v247_v15 = vmul.f32 0.5, %v1087_v62  ;;  %1092 = vtanh.f32 %v254_v61 }
 0x12f   :  { %v251_v17 = vmul.f32 0.5, %v1089_v63 }
 0x130   :  { %v248_v18 = vadd.f32 0.5, %v247_v15 }
 0x131   :  { %v252_v19 = vadd.f32 0.5, %v251_v17 }
 0x132   :  { %v1091_v20 = vpop.eup %1090 }
 0x133   :  { %v258_v21 = vmul.f32 %v252_v19, %v150_v41  ;;  %v259_v22 = vmul.f32 %v1091_v20, %v248_v18  ;;  %v1032_v19 = vld [vmem:[%s1586_s0 + $0x1c] sm:$0x3]  ;;  %v1033_v20 = vld [vmem:[%s1586_s0 + $0x1e] sm:$0x3] }
 0x134   :  { %v1093_v23 = vpop.eup %1092 }
 0x135   :  { %v260_v24 = vadd.f32 %v259_v22, %v258_v21  ;;  %v256_v25 = vmul.f32 0.5, %v1093_v23 }
 0x137   :  { %1094 = vtanh.f32 %v260_v24  ;;  %v257_v26 = vadd.f32 0.5, %v256_v25 }
 0x13d   :  { %v1095_v27 = vpop.eup %1094 }
 0x13e   :  { %v262_v28 = vmul.f32 %v1095_v27, %v257_v26 }
 0x140   :  { %1026 = vmatmul.msk.f32.vlgmr.msra.gmra.mxu0 %vm47_vm0, %v262_v28  ;;  %1027 = vmatmul.msk.f32.vlgmr.msra.gmra.mxu1 %vm47_vm0, %v262_v28 }
 0x141   :  { %1028 = vmatmul.msk.f32.vlgmr.msra.gmra.mxu2 %vm47_vm0, %v262_v28  ;;  %1029 = vmatmul.msk.f32.vlgmr.msra.gmra.mxu3 %vm47_vm0, %v262_v28 }
 0x142   :  { %503 = vmatpush.msra.mxu0 %v1222_v0  ;;  %524 = vmatpush.msra.mxu1 %v1227_v1 }
 0x143   :  { %545 = vmatpush.msra.mxu2 %v1232_v2  ;;  %566 = vmatpush.msra.mxu3 %v1272_v9 }
 0x144   :  { %504 = vmatpush.msra.mxu0 %v1239_v3  ;;  %525 = vmatpush.msra.mxu1 %v1244_v4 }
 0x145   :  { %546 = vmatpush.msra.mxu2 %v1249_v5  ;;  %567 = vmatpush.msra.mxu3 %v1289_v12 }
 0x146   :  { %505 = vmatpush.msra.mxu0 %v1255_v6  ;;  %526 = vmatpush.msra.mxu1 %v1260_v7 }
 0x147   :  { %547 = vmatpush.msra.mxu2 %v1267_v8  ;;  %568 = vmatpush.msra.mxu3 %v1305_v14 }
 0x148   :  { %506 = vmatpush.msra.mxu0 %v1279_v10  ;;  %527 = vmatpush.msra.mxu1 %v1284_v11 }
 0x149   :  { %548 = vmatpush.msra.mxu2 %v1296_v13  ;;  %569 = vmatpush.msra.mxu3 %v1311_v16 }
 0x1bd   :  { %v288_v31 = vpop.f32.mrf.mxu0  ;;  %v309_v32 = vpop.f32.mrf.mxu1 }
 0x1be   :  { %v291_v33 = vadd.f32 %v1022_v29, %v288_v31  ;;  %v312_v34 = vadd.f32 %v1023_v30, %v309_v32 }
 0x1c0   :  { %v355_v35 = vmul.f32 0.5, %v291_v33  ;;  %v359_v36 = vmul.f32 0.5, %v312_v34 }
 0x1c2   :  { %1096 = vtanh.f32 %v355_v35 }
 0x1c3   :  { %1098 = vtanh.f32 %v359_v36 }
 0x1c4   :  { %v330_v39 = vpop.f32.mrf.mxu2  ;;  %v351_v40 = vpop.f32.mrf.mxu3 }
 0x1c5   :  { %v333_v41 = vadd.f32 %v1024_v37, %v330_v39  ;;  %v354_v42 = vadd.f32 %v1025_v38, %v351_v40 }
 0x1c7   :  { %1100 = vtanh.f32 %v333_v41  ;;  %v364_v43 = vmul.f32 0.5, %v354_v42  ;;  %v1038_v41 = vld [vmem:[%s1586_s0 + $0x20] sm:$0x3]  ;;  %v1039_v42 = vld [vmem:[%s1586_s0 + $0x22] sm:$0x3] }
 0x1c8   :  { %v1097_v44 = vpop.eup %1096 }
 0x1c9   :  { %v1099_v45 = vpop.eup %1098  ;;  %v357_v46 = vmul.f32 0.5, %v1097_v44  ;;  %1102 = vtanh.f32 %v364_v43 }
 0x1ca   :  { %v361_v47 = vmul.f32 0.5, %v1099_v45 }
 0x1cb   :  { %v358_v48 = vadd.f32 0.5, %v357_v46 }
 0x1cc   :  { %v362_v49 = vadd.f32 0.5, %v361_v47 }
 0x1cd   :  { %v1101_v50 = vpop.eup %1100 }
 0x1ce   :  { %v368_v51 = vmul.f32 %v362_v49, %v260_v24  ;;  %v369_v52 = vmul.f32 %v1101_v50, %v358_v48  ;;  %v1040_v49 = vld [vmem:[%s1586_s0 + $0x24] sm:$0x3]  ;;  %v1041_v50 = vld [vmem:[%s1586_s0 + $0x26] sm:$0x3] }
 0x1cf   :  { %v1103_v53 = vpop.eup %1102 }
 0x1d0   :  { %v370_v54 = vadd.f32 %v369_v52, %v368_v51  ;;  %v366_v55 = vmul.f32 0.5, %v1103_v53 }
 0x1d2   :  { %1104 = vtanh.f32 %v370_v54  ;;  %v367_v56 = vadd.f32 0.5, %v366_v55 }
 0x1d8   :  { %v1105_v57 = vpop.eup %1104 }
 0x1d9   :  { %v372_v58 = vmul.f32 %v1105_v57, %v367_v56 }
 0x1db   :  { %1034 = vmatmul.msk.f32.vlgmr.msrb.gmra.mxu0 %vm47_vm0, %v372_v58  ;;  %1035 = vmatmul.msk.f32.vlgmr.msrb.gmra.mxu1 %vm47_vm0, %v372_v58 }
 0x1dc   :  { %1036 = vmatmul.msk.f32.vlgmr.msrb.gmra.mxu2 %vm47_vm0, %v372_v58  ;;  %1037 = vmatmul.msk.f32.vlgmr.msrb.gmra.mxu3 %vm47_vm0, %v372_v58 }
 0x1dd   :  { %613 = vmatpush.msrb.mxu0 %v1222_v0  ;;  %634 = vmatpush.msrb.mxu1 %v1227_v1 }
 0x1de   :  { %655 = vmatpush.msrb.mxu2 %v1232_v2  ;;  %676 = vmatpush.msrb.mxu3 %v1272_v9 }
 0x1df   :  { %614 = vmatpush.msrb.mxu0 %v1239_v3  ;;  %635 = vmatpush.msrb.mxu1 %v1244_v4 }
 0x1e0   :  { %656 = vmatpush.msrb.mxu2 %v1249_v5  ;;  %677 = vmatpush.msrb.mxu3 %v1289_v12 }
 0x1e1   :  { %615 = vmatpush.msrb.mxu0 %v1255_v6  ;;  %636 = vmatpush.msrb.mxu1 %v1260_v7 }
 0x1e2   :  { %657 = vmatpush.msrb.mxu2 %v1267_v8  ;;  %678 = vmatpush.msrb.mxu3 %v1305_v14 }
 0x1e3   :  { %616 = vmatpush.msrb.mxu0 %v1279_v10  ;;  %637 = vmatpush.msrb.mxu1 %v1284_v11 }
 0x1e4   :  { %658 = vmatpush.msrb.mxu2 %v1296_v13  ;;  %679 = vmatpush.msrb.mxu3 %v1311_v16 }
 0x258   :  { %v398_v61 = vpop.f32.mrf.mxu0  ;;  %v419_v62 = vpop.f32.mrf.mxu1 }
 0x259   :  { %v401_v63 = vadd.f32 %v1030_v59, %v398_v61  ;;  %v422_v15 = vadd.f32 %v1031_v60, %v419_v62 }
 0x25b   :  { %v465_v17 = vmul.f32 0.5, %v401_v63  ;;  %v469_v18 = vmul.f32 0.5, %v422_v15 }
 0x25d   :  { %1106 = vtanh.f32 %v465_v17 }
 0x25e   :  { %1108 = vtanh.f32 %v469_v18 }
 0x25f   :  { %v440_v21 = vpop.f32.mrf.mxu2  ;;  %v461_v22 = vpop.f32.mrf.mxu3 }
 0x260   :  { %v443_v23 = vadd.f32 %v1032_v19, %v440_v21  ;;  %v464_v24 = vadd.f32 %v1033_v20, %v461_v22 }
 0x262   :  { %1110 = vtanh.f32 %v443_v23  ;;  %v474_v25 = vmul.f32 0.5, %v464_v24 }
 0x263   :  { %v1107_v26 = vpop.eup %1106 }
 0x264   :  { %v1109_v27 = vpop.eup %1108  ;;  %v467_v28 = vmul.f32 0.5, %v1107_v26  ;;  %1112 = vtanh.f32 %v474_v25 }
 0x265   :  { %v471_v29 = vmul.f32 0.5, %v1109_v27 }
 0x266   :  { %v468_v30 = vadd.f32 0.5, %v467_v28 }
 0x267   :  { %v472_v31 = vadd.f32 0.5, %v471_v29 }
 0x268   :  { %v1111_v32 = vpop.eup %1110 }
 0x269   :  { %v478_v33 = vmul.f32 %v472_v31, %v370_v54  ;;  %v479_v34 = vmul.f32 %v1111_v32, %v468_v30 }
 0x26a   :  { %v1113_v35 = vpop.eup %1112 }
 0x26b   :  { %v480_v36 = vadd.f32 %v479_v34, %v478_v33  ;;  %v476_v37 = vmul.f32 0.5, %v1113_v35 }
 0x26d   :  { %1114 = vtanh.f32 %v480_v36  ;;  %v477_v38 = vadd.f32 0.5, %v476_v37  ;;  %v1054_v37 = vld [vmem:[%s1586_s0 + $0x30] sm:$0x3] }
 0x273   :  { %v1115_v39 = vpop.eup %1114 }
 0x274   :  { %v482_v40 = vmul.f32 %v1115_v39, %v477_v38  ;;  %v1055_v38 = vld [vmem:[%s1586_s0 + $0x32] sm:$0x3] }
 0x276   :  { %1042 = vmatmul.msk.f32.vlgmr.msra.gmra.mxu0 %vm47_vm0, %v482_v40  ;;  %1043 = vmatmul.msk.f32.vlgmr.msra.gmra.mxu1 %vm47_vm0, %v482_v40 }
 0x277   :  { %1044 = vmatmul.msk.f32.vlgmr.msra.gmra.mxu2 %vm47_vm0, %v482_v40  ;;  %1045 = vmatmul.msk.f32.vlgmr.msra.gmra.mxu3 %vm47_vm0, %v482_v40 }
 0x278   :  { %723 = vmatpush.msra.mxu0 %v1222_v0  ;;  %744 = vmatpush.msra.mxu1 %v1227_v1 }
 0x279   :  { %765 = vmatpush.msra.mxu2 %v1232_v2  ;;  %786 = vmatpush.msra.mxu3 %v1272_v9 }
 0x27a   :  { %724 = vmatpush.msra.mxu0 %v1239_v3  ;;  %745 = vmatpush.msra.mxu1 %v1244_v4 }
 0x27b   :  { %766 = vmatpush.msra.mxu2 %v1249_v5  ;;  %787 = vmatpush.msra.mxu3 %v1289_v12 }
 0x27c   :  { %725 = vmatpush.msra.mxu0 %v1255_v6  ;;  %746 = vmatpush.msra.mxu1 %v1260_v7 }
 0x27d   :  { %767 = vmatpush.msra.mxu2 %v1267_v8  ;;  %788 = vmatpush.msra.mxu3 %v1305_v14 }
 0x27e   :  { %726 = vmatpush.msra.mxu0 %v1279_v10  ;;  %747 = vmatpush.msra.mxu1 %v1284_v11 }
 0x27f   :  { %768 = vmatpush.msra.mxu2 %v1296_v13  ;;  %789 = vmatpush.msra.mxu3 %v1311_v16 }
 0x2f3   :  { %v508_v43 = vpop.f32.mrf.mxu0  ;;  %v529_v44 = vpop.f32.mrf.mxu1 }
 0x2f4   :  { %v511_v45 = vadd.f32 %v1038_v41, %v508_v43  ;;  %v532_v46 = vadd.f32 %v1039_v42, %v529_v44 }
 0x2f6   :  { %v575_v47 = vmul.f32 0.5, %v511_v45  ;;  %v579_v48 = vmul.f32 0.5, %v532_v46  ;;  %v1056_v45 = vld [vmem:[%s1586_s0 + $0x34] sm:$0x3]  ;;  %v1057_v46 = vld [vmem:[%s1586_s0 + $0x36] sm:$0x3] }
 0x2f8   :  { %1116 = vtanh.f32 %v575_v47 }
 0x2f9   :  { %1118 = vtanh.f32 %v579_v48 }
 0x2fa   :  { %v550_v51 = vpop.f32.mrf.mxu2  ;;  %v571_v52 = vpop.f32.mrf.mxu3 }
 0x2fb   :  { %v553_v53 = vadd.f32 %v1040_v49, %v550_v51  ;;  %v574_v54 = vadd.f32 %v1041_v50, %v571_v52 }
 0x2fd   :  { %1120 = vtanh.f32 %v553_v53  ;;  %v584_v55 = vmul.f32 0.5, %v574_v54 }
 0x2fe   :  { %v1117_v56 = vpop.eup %1116 }
 0x2ff   :  { %v1119_v57 = vpop.eup %1118  ;;  %v577_v58 = vmul.f32 0.5, %v1117_v56  ;;  %1122 = vtanh.f32 %v584_v55 }
 0x300   :  { %v581_v59 = vmul.f32 0.5, %v1119_v57 }
 0x301   :  { %v578_v60 = vadd.f32 0.5, %v577_v58 }
 0x302   :  { %v582_v61 = vadd.f32 0.5, %v581_v59 }
 0x303   :  { %v1121_v62 = vpop.eup %1120 }
 0x304   :  { %v588_v63 = vmul.f32 %v582_v61, %v480_v36  ;;  %v589_v15 = vmul.f32 %v1121_v62, %v578_v60 }
 0x305   :  { %v1123_v17 = vpop.eup %1122 }
 0x306   :  { %v590_v18 = vadd.f32 %v589_v15, %v588_v63  ;;  %v586_v19 = vmul.f32 0.5, %v1123_v17 }
 0x308   :  { %1124 = vtanh.f32 %v590_v18  ;;  %v587_v20 = vadd.f32 0.5, %v586_v19  ;;  %v926_v19 = vld [vmem:[%s1588_s2 + $0x18] sm:$0xff] }
 0x30e   :  { %v1125_v21 = vpop.eup %1124 }
 0x30f   :  { %v592_v22 = vmul.f32 %v1125_v21, %v587_v20  ;;  %v925_v20 = vld [vmem:[%s1588_s2 + $0x10] sm:$0xff]  ;;  %v924_v21 = vld [vmem:[%s1588_s2 + $0x8] sm:$0xff] }
 0x311   :  { %1050 = vmatmul.msk.f32.vlgmr.msrb.gmra.mxu0 %vm47_vm0, %v592_v22  ;;  %1051 = vmatmul.msk.f32.vlgmr.msrb.gmra.mxu1 %vm47_vm0, %v592_v22 }
 0x312   :  { %1052 = vmatmul.msk.f32.vlgmr.msrb.gmra.mxu2 %vm47_vm0, %v592_v22  ;;  %1053 = vmatmul.msk.f32.vlgmr.msrb.gmra.mxu3 %vm47_vm0, %v592_v22  ;;  %v923_v22 = vld [vmem:[%s1588_s2] sm:$0xff] }
 0x313   :  { %833 = vmatpush.msrb.mxu0 %v1222_v0  ;;  %854 = vmatpush.msrb.mxu1 %v1227_v1  ;;  %v1046_v0 = vld [vmem:[%s1586_s0 + $0x28] sm:$0x3]  ;;  %v1047_v1 = vld [vmem:[%s1586_s0 + $0x2a] sm:$0x3] }
 0x314   :  { %875 = vmatpush.msrb.mxu2 %v1232_v2  ;;  %896 = vmatpush.msrb.mxu3 %v1272_v9  ;;  %v1049_v9 = vld [vmem:[%s1586_s0 + $0x2e] sm:$0x3] }
 0x315   :  { %834 = vmatpush.msrb.mxu0 %v1239_v3  ;;  %855 = vmatpush.msrb.mxu1 %v1244_v4 }
 0x316   :  { %876 = vmatpush.msrb.mxu2 %v1249_v5  ;;  %897 = vmatpush.msrb.mxu3 %v1289_v12 }
 0x317   :  { %835 = vmatpush.msrb.mxu0 %v1255_v6  ;;  %856 = vmatpush.msrb.mxu1 %v1260_v7 }
 0x318   :  { %877 = vmatpush.msrb.mxu2 %v1267_v8  ;;  %898 = vmatpush.msrb.mxu3 %v1305_v14  ;;  %v1048_v8 = vld [vmem:[%s1586_s0 + $0x2c] sm:$0x3] }
 0x319   :  { %836 = vmatpush.msrb.mxu0 %v1279_v10  ;;  %857 = vmatpush.msrb.mxu1 %v1284_v11 }
 0x31a   :  { %878 = vmatpush.msrb.mxu2 %v1296_v13  ;;  %899 = vmatpush.msrb.mxu3 %v1311_v16 }
 0x38e   :  { %v618_v2 = vpop.f32.mrf.mxu0  ;;  %v639_v3 = vpop.f32.mrf.mxu1 }
 0x38f   :  { %v621_v4 = vadd.f32 %v1046_v0, %v618_v2  ;;  %v642_v5 = vadd.f32 %v1047_v1, %v639_v3  ;;  %v1062_v0 = vld [vmem:[%s1586_s0 + $0x38] sm:$0x3]  ;;  %v1063_v1 = vld [vmem:[%s1586_s0 + $0x3a] sm:$0x3]  ;;  %v956_v3 = vld [vmem:[%s1590_s4 + $0x10] sm:$0xff] }
 0x390   :  { %v957_v2 = vld [vmem:[%s1590_s4 + $0x18] sm:$0xff] }
 0x391   :  { %v685_v6 = vmul.f32 0.5, %v621_v4  ;;  %v689_v7 = vmul.f32 0.5, %v642_v5 }
 0x393   :  { %1126 = vtanh.f32 %v685_v6  ;;  %v955_v6 = vld [vmem:[%s1590_s4 + $0x8] sm:$0xff] }
 0x394   :  { %1128 = vtanh.f32 %v689_v7 }
 0x395   :  { %v660_v10 = vpop.f32.mrf.mxu2  ;;  %v681_v11 = vpop.f32.mrf.mxu3 }
 0x396   :  { %v663_v12 = vadd.f32 %v1048_v8, %v660_v10  ;;  %v684_v13 = vadd.f32 %v1049_v9, %v681_v11  ;;  %v1064_v11 = vld [vmem:[%s1586_s0 + $0x3c] sm:$0x3] }
 0x398   :  { %1130 = vtanh.f32 %v663_v12  ;;  %v694_v14 = vmul.f32 0.5, %v684_v13  ;;  %v1065_v12 = vld [vmem:[%s1586_s0 + $0x3e] sm:$0x3] }
 0x399   :  { %v1127_v16 = vpop.eup %1126 }
 0x39a   :  { %v1129_v23 = vpop.eup %1128  ;;  %v687_v24 = vmul.f32 0.5, %v1127_v16  ;;  %1132 = vtanh.f32 %v694_v14 }
 0x39b   :  { %v691_v25 = vmul.f32 0.5, %v1129_v23 }
 0x39c   :  { %v688_v26 = vadd.f32 0.5, %v687_v24 }
 0x39d   :  { %v692_v27 = vadd.f32 0.5, %v691_v25 }
 0x39e   :  { %v1131_v28 = vpop.eup %1130 }
 0x39f   :  { %v698_v29 = vmul.f32 %v692_v27, %v590_v18  ;;  %v699_v30 = vmul.f32 %v1131_v28, %v688_v26 }
 0x3a0   :  { %v1133_v31 = vpop.eup %1132 }
 0x3a1   :  { %v700_v32 = vadd.f32 %v699_v30, %v698_v29  ;;  %v696_v33 = vmul.f32 0.5, %v1133_v31 }
 0x3a3   :  { %1134 = vtanh.f32 %v700_v32  ;;  %v697_v34 = vadd.f32 0.5, %v696_v33 }
 0x3a9   :  { %v1135_v35 = vpop.eup %1134 }
 0x3aa   :  { %v702_v36 = vmul.f32 %v1135_v35, %v697_v34 }
 0x3ac   :  { %1058 = vmatmul.msk.f32.vlgmr.msra.gmra.mxu0 %vm47_vm0, %v702_v36  ;;  %1059 = vmatmul.msk.f32.vlgmr.msra.gmra.mxu1 %vm47_vm0, %v702_v36 }
 0x3ad   :  { %1060 = vmatmul.msk.f32.vlgmr.msra.gmra.mxu2 %vm47_vm0, %v702_v36  ;;  %1061 = vmatmul.msk.f32.vlgmr.msra.gmra.mxu3 %vm47_vm0, %v702_v36 }
 0x3ae   :  { %946 = vmatpush.msra.mxu0 %v926_v19  ;;  %977 = vmatpush.msra.mxu1 %v957_v2 }
 0x3b0   :  { %947 = vmatpush.msra.mxu0 %v925_v20  ;;  %978 = vmatpush.msra.mxu1 %v956_v3 }
 0x3b2   :  { %948 = vmatpush.msra.mxu0 %v924_v21  ;;  %979 = vmatpush.msra.mxu1 %v955_v6 }
 0x3b4   :  { %949 = vmatpush.msra.mxu0 %v923_v22 }
 0x429   :  { %v728_v39 = vpop.f32.mrf.mxu0  ;;  %v749_v40 = vpop.f32.mrf.mxu1 }
 0x42a   :  { %v731_v41 = vadd.f32 %v1054_v37, %v728_v39  ;;  %v752_v42 = vadd.f32 %v1055_v38, %v749_v40  ;;  %v954_v40 = vld [vmem:[%s1590_s4] sm:$0xff] }
 0x42b   :  { %980 = vmatpush.msra.mxu1 %v954_v40 }
 0x42c   :  { %v795_v43 = vmul.f32 0.5, %v731_v41  ;;  %v799_v44 = vmul.f32 0.5, %v752_v42  ;;  %v1074_v41 = vld [vmem:[%s1589_s3] ss:$0 sm:$0xff] }
 0x42e   :  { %1136 = vtanh.f32 %v795_v43 }
 0x42f   :  { %1138 = vtanh.f32 %v799_v44  ;;  %v1075_v44 = vld [vmem:[%s1591_s5] ss:$0 sm:$0xff] }
 0x430   :  { %v770_v47 = vpop.f32.mrf.mxu2  ;;  %v791_v48 = vpop.f32.mrf.mxu3 }
 0x431   :  { %v773_v49 = vadd.f32 %v1056_v45, %v770_v47  ;;  %v794_v50 = vadd.f32 %v1057_v46, %v791_v48 }
 0x433   :  { %1140 = vtanh.f32 %v773_v49  ;;  %v804_v51 = vmul.f32 0.5, %v794_v50 }
 0x434   :  { %v1137_v52 = vpop.eup %1136 }
 0x435   :  { %v1139_v53 = vpop.eup %1138  ;;  %v797_v54 = vmul.f32 0.5, %v1137_v52  ;;  %1142 = vtanh.f32 %v804_v51 }
 0x436   :  { %v801_v55 = vmul.f32 0.5, %v1139_v53 }
 0x437   :  { %v798_v56 = vadd.f32 0.5, %v797_v54 }
 0x438   :  { %v802_v57 = vadd.f32 0.5, %v801_v55 }
 0x439   :  { %v1141_v58 = vpop.eup %1140 }
 0x43a   :  { %v808_v59 = vmul.f32 %v802_v57, %v700_v32  ;;  %v809_v60 = vmul.f32 %v1141_v58, %v798_v56 }
 0x43b   :  { %v1143_v61 = vpop.eup %1142 }
 0x43c   :  { %v810_v62 = vadd.f32 %v809_v60, %v808_v59  ;;  %v806_v63 = vmul.f32 0.5, %v1143_v61 }
 0x43e   :  { %1144 = vtanh.f32 %v810_v62  ;;  %v807_v15 = vadd.f32 0.5, %v806_v63 }
 0x444   :  { %v1145_v17 = vpop.eup %1144 }
 0x445   :  { %v812_v18 = vmul.f32 %v1145_v17, %v807_v15 }
 0x447   :  { %1066 = vmatmul.msk.f32.vlgmr.msrb.gmra.mxu0 %vm47_vm0, %v812_v18  ;;  %1067 = vmatmul.msk.f32.vlgmr.msrb.gmra.mxu1 %vm47_vm0, %v812_v18 }
 0x448   :  { %1068 = vmatmul.msk.f32.vlgmr.msrb.gmra.mxu2 %vm47_vm0, %v812_v18  ;;  %1069 = vmatmul.msk.f32.vlgmr.msrb.gmra.mxu3 %vm47_vm0, %v812_v18 }
 0x4c4   :  { %v838_v4 = vpop.f32.mrf.mxu0  ;;  %v859_v5 = vpop.f32.mrf.mxu1 }
 0x4c5   :  { %v841_v7 = vadd.f32 %v1062_v0, %v838_v4  ;;  %v862_v8 = vadd.f32 %v1063_v1, %v859_v5 }
 0x4c7   :  { %v905_v9 = vmul.f32 0.5, %v841_v7  ;;  %v909_v10 = vmul.f32 0.5, %v862_v8 }
 0x4c9   :  { %1146 = vtanh.f32 %v905_v9 }
 0x4ca   :  { %1148 = vtanh.f32 %v909_v10 }
 0x4cb   :  { %v880_v13 = vpop.f32.mrf.mxu2  ;;  %v901_v14 = vpop.f32.mrf.mxu3 }
 0x4cc   :  { %v883_v16 = vadd.f32 %v1064_v11, %v880_v13  ;;  %v904_v23 = vadd.f32 %v1065_v12, %v901_v14 }
 0x4ce   :  { %1150 = vtanh.f32 %v883_v16  ;;  %v914_v24 = vmul.f32 0.5, %v904_v23 }
 0x4cf   :  { %v1147_v25 = vpop.eup %1146 }
 0x4d0   :  { %v1149_v26 = vpop.eup %1148  ;;  %v907_v27 = vmul.f32 0.5, %v1147_v25  ;;  %1152 = vtanh.f32 %v914_v24 }
 0x4d1   :  { %v911_v28 = vmul.f32 0.5, %v1149_v26 }
 0x4d2   :  { %v908_v29 = vadd.f32 0.5, %v907_v27 }
 0x4d3   :  { %v912_v30 = vadd.f32 0.5, %v911_v28 }
 0x4d4   :  { %v1151_v31 = vpop.eup %1150 }
 0x4d5   :  { %v918_v32 = vmul.f32 %v912_v30, %v810_v62  ;;  %v919_v33 = vmul.f32 %v1151_v31, %v908_v29 }
 0x4d6   :  { %v1153_v34 = vpop.eup %1152 }
 0x4d7   :  { %v920_v35 = vadd.f32 %v919_v33, %v918_v32  ;;  %v916_v36 = vmul.f32 0.5, %v1153_v34 }
 0x4d9   :  { %1154 = vtanh.f32 %v920_v35  ;;  %v917_v37 = vadd.f32 0.5, %v916_v36 }
 0x4df   :  { %v1155_v38 = vpop.eup %1154 }
 0x4e0   :  { %v922_v39 = vmul.f32 %v1155_v38, %v917_v37 }
 0x4e2   :  { %1070 = vmatmul.msk.f32.vlgmr.msra.gmra.mxu0 %vm47_vm0, %v922_v39 }
 0x55f   :  { %v951_v42 = vpop.f32.mrf.mxu0 }
 0x560   :  { %v952_v43 = vadd.f32 %v1074_v41, %v951_v42 }
 0x562   :  { %1071 = vmatmul.msk.f32.vlgmr.msra.gmra.mxu1 %vm47_vm0, %v952_v43 }
 0x5df   :  { %v982_v45 = vpop.f32.mrf.mxu1 }
 0x5e0   :  { %v983_v46 = vadd.f32 %v1075_v44, %v982_v45 }
 0x5e2   :  { %985 = vst [vmem:[#allocation2] sm:$0x3] %v983_v46 }
 0x5e3   :  { %996 = dma.vmem_to_hbm [thread:$0]  %s992_s12, 32, %s994_s15, [#allocation3]  }
 0x5e4   :  { %1180 = dma.done.wait [#allocation3], 32  }
 0x5e5   :  { %1181 = vsyncadd [#allocation3], 4294967264 }
 0x5e6   :  { %1001 = vsyncpa [#allocation3], 1 }

</bundles_post_ra>
